<compile_context>
chip_gen: v6e
topology: v6e:2x2x1
jax: 0.10.0
libtpu: 0.0.40
codegen_flags: <defaults>
</compile_context>

<pallas_src>
import numpy as np
import jax
import jax.numpy as jnp
from jax import lax
from jax.experimental import pallas as pl
from jax.experimental.pallas import tpu as pltpu

COMPUTE_DTYPE = jnp.bfloat16   # MXU operand dtype; accumulation is always f32


# ---------------------------------------------------------------------------
# Fused kernel (closure over the static layer structure)
# ---------------------------------------------------------------------------

def make_fused_kernel(conv_meta, h_last, s_last, H0, n_fc_extra):
    """conv_meta: list of dicts with static ints {k, pad, p, s_in, cout} per conv block."""

    def kernel(*refs):
        f32 = jnp.float32
        cdt = COMPUTE_DTYPE
        idx = 0
        a = refs[idx][...].astype(f32); idx += 1     # (bt*H0, W0*C0) activation slab
        hh = refs[idx][...]; idx += 1                # (bt*H0, 1) f32: row index mod H0
        rows = a.shape[0]

        # ---- conv blocks: roll+mask height bands, banded lane matmul, folded BN, ReLU,
        # ----              MaxPool via sublane/lane rolls (rows & lanes stay dilated) ----
        for lc in conv_meta:
            Wb, sc, sh = refs[idx], refs[idx + 1], refs[idx + 2]; idx += 3
            k, pad, s, p, cout = lc['k'], lc['pad'], lc['s_in'], lc['p'], lc['cout']
            acc = None
            for kh in range(k):                       # static unroll over kernel rows
                d = kh - pad
                if d == 0:
                    band = a
                else:
                    # height band: sublane roll (XLU) + zero out-of-range rows (VPU mask);
                    # valid iff 0 <= (row mod H0) + s*d < H0  (height zero-padding)
                    rolled = pltpu.roll(a, shift=(-s * d) % rows, axis=0)
                    valid = (hh >= float(-s * d)) & (hh <= float(H0 - 1 - s * d))
                    band = jnp.where(valid, rolled, 0.0)
                t = jnp.dot(band.astype(cdt), Wb[kh], preferred_element_type=f32)
                acc = t if acc is None else acc + t
            # conv bias + BatchNorm2d(eval) folded into per-column scale/shift, then ReLU
            y = jnp.maximum(acc * sc[...] + sh[...], 0.0)
            # MaxPool rows: max over p sublane rolls (valid rows keep dilation s -> s*p)
            ym = y
            for d in range(1, p):
                ym = jnp.maximum(ym, pltpu.roll(y, shift=(-s * d) % rows, axis=0))
            # MaxPool cols: max over p lane rolls by d*cout (valid width slots -> stride p,
            # the downsample itself is folded into the next layer's weight)
            lanes = ym.shape[1]
            yc = ym
            for d in range(1, p):
                yc = jnp.maximum(yc, pltpu.roll(ym, shift=(-d * cout) % lanes, axis=1))
            a = yc

        # ---- first FC layer: NCHW flatten folded into W0; per-feature-row rolls accumulate
        # ---- the full contraction at rows n*H0; compact to (bt, D1) with one tiny matmul ---
        W0, P, sc0, sh0 = refs[idx], refs[idx + 1], refs[idx + 2], refs[idx + 3]; idx += 4
        hacc = None
        for i in range(h_last):
            src = a if i == 0 else pltpu.roll(a, shift=(-s_last * i) % rows, axis=0)
            t = jnp.dot(src.astype(cdt), W0[i], preferred_element_type=f32)
            hacc = t if hacc is None else hacc + t
        h = jnp.dot(P[...], hacc.astype(cdt), preferred_element_type=f32)   # (bt, D1)
        h = jnp.maximum(h * sc0[...] + sh0[...], 0.0)
        # TODO(synk): Dropout is identity (eval); BatchNorm uses running stats (eval).

        # ---- remaining FC layers ----
        for _ in range(n_fc_extra):
            Wl, scl, shl = refs[idx], refs[idx + 1], refs[idx + 2]; idx += 3
            h = jnp.dot(h.astype(cdt), Wl[...], preferred_element_type=f32)
            h = jnp.maximum(h * scl[...] + shl[...], 0.0)

        # ---- head (lane-dense: num_classes padded to 128 in the weight/bias) ----
        Wh, bh, o_ref = refs[idx], refs[idx + 1], refs[idx + 2]
        o_ref[...] = (jnp.dot(h.astype(cdt), Wh[...], preferred_element_type=f32)
                      + bh[...]).astype(o_ref.dtype)

    return kernel


# ---------------------------------------------------------------------------
# Parameter construction (deterministic, synthetic; BN/bias/flatten/pool pre-folded)
# ---------------------------------------------------------------------------

def make_params(key,
                input_channels=3,
                input_size=(16, 16),
                filters=(8, 16),
                kernel_sizes=(3, 3),
                pool_sizes=(2, 2),
                fc_dims=(32,),
                num_classes=5,
                eps=1e-5):
    assert len(filters) == len(kernel_sizes) == len(pool_sizes)
    assert len(fc_dims) >= 1   # TODO(synk): fc_dims=[] (head directly off the flatten) not supported
    cnt = [0]

    def randn(shape, scale=1.0):
        cnt[0] += 1
        return scale * np.asarray(
            jax.random.normal(jax.random.fold_in(key, cnt[0]), shape, jnp.float32))

    H0, W0 = input_size
    H, W = H0, W0
    Cin = input_channels
    wdil = 1      # width dilation of the incoming lane layout (prev pool, 1 for the input)
    s_in = 1      # row (sublane) dilation of the incoming slab (product of previous pools)
    conv_ops, conv_meta, conv_raw = [], [], []

    for (Cout, k, p) in zip(filters, kernel_sizes, pool_sizes):
        assert k % 2 == 1, "only odd kernel sizes supported (padding=k//2 keeps H,W)"
        assert H % p == 0 and W % p == 0
        pad = k // 2

        wgt = randn((k, k, Cin, Cout), 1.0 / np.sqrt(Cin * k * k))   # HWIO
        bias = randn((Cout,), 0.1)
        gamma = 1.0 + randn((Cout,), 0.1)
        beta = randn((Cout,), 0.1)
        rmean = randn((Cout,), 0.1)
        rvar = 1.0 + np.abs(randn((Cout,), 0.1))

        # Conv bias + BatchNorm2d (eval, running stats) folded into per-column scale/shift.
        inv = gamma / np.sqrt(rvar + eps)
        scale_row = np.tile(inv, W)[None, :].astype(np.float32)                        # (1, W*Cout)
        shift_row = np.tile(beta + (bias - rmean) * inv, W)[None, :].astype(np.float32)

        # Banded conv-as-matmul weights over the (width-dilated) input lane layout; the width
        # zero-padding and the previous pool's lane downsample are folded in (zero rows at
        # invalid lanes kill the pool's "garbage" lanes exactly).
        lane_w = W * wdil
        Wb = np.zeros((k, lane_w * Cin, W * Cout), np.float32)
        for kh in range(k):
            for w_out in range(W):
                for kw in range(k):
                    w_src = w_out + kw - pad
                    if 0 <= w_src < W:
                        r0 = (wdil * w_src) * Cin
                        c0 = w_out * Cout
                        Wb[kh, r0:r0 + Cin, c0:c0 + Cout] = wgt[kh, kw]

        conv_ops.append(dict(W=jnp.asarray(Wb, COMPUTE_DTYPE),
                             scale=jnp.asarray(scale_row),
                             shift=jnp.asarray(shift_row)))
        conv_meta.append(dict(k=k, pad=pad, p=p, s_in=s_in, cout=Cout))
        conv_raw.append(dict(w=jnp.asarray(wgt), b=jnp.asarray(bias),
                             gamma=jnp.asarray(gamma), beta=jnp.asarray(beta),
                             mean=jnp.asarray(rmean), var=jnp.asarray(rvar), p=p, pad=pad))
        Cin = Cout
        wdil = p
        s_in *= p
        H //= p
        W //= p

    # ---- first FC layer: PyTorch NCHW flatten order folded into the weight (dilated lanes) ----
    C_last, H_last, W_last = Cin, H, W
    lane_w_last = W_last * wdil
    flat = C_last * H_last * W_last
    D1 = fc_dims[0]
    fc_w = randn((flat, D1), 1.0 / np.sqrt(flat))
    fc_b = randn((D1,), 0.1)
    g1 = 1.0 + randn((D1,), 0.1)
    b1 = randn((D1,), 0.1)
    m1 = randn((D1,), 0.1)
    v1 = 1.0 + np.abs(randn((D1,), 0.1))
    inv1 = g1 / np.sqrt(v1 + eps)

    W0fc = np.zeros((H_last, lane_w_last * C_last, D1), np.float32)
    for i in range(H_last):
        for w in range(W_last):
            for c in range(C_last):
                W0fc[i, (wdil * w) * C_last + c, :] = fc_w[c * H_last * W_last + i * W_last + w, :]
    fc0 = dict(W=jnp.asarray(W0fc, COMPUTE_DTYPE),
               scale=jnp.asarray(inv1[None, :], jnp.float32),
               shift=jnp.asarray((b1 + (fc_b - m1) * inv1)[None, :], jnp.float32))
    fc0_raw = dict(w=jnp.asarray(fc_w), b=jnp.asarray(fc_b), gamma=jnp.asarray(g1),
                   beta=jnp.asarray(b1), mean=jnp.asarray(m1), var=jnp.asarray(v1))

    # ---- remaining FC layers (Linear + BN1d(eval) + ReLU + Dropout(eval)) ----
    fc_rest, fc_rest_raw = [], []
    D_prev = D1
    for Dn in fc_dims[1:]:
        w_ = randn((D_prev, Dn), 1.0 / np.sqrt(D_prev))
        bb = randn((Dn,), 0.1)
        g = 1.0 + randn((Dn,), 0.1)
        b = randn((Dn,), 0.1)
        m = randn((Dn,), 0.1)
        v = 1.0 + np.abs(randn((Dn,), 0.1))
        invn = g / np.sqrt(v + eps)
        fc_rest.append(dict(W=jnp.asarray(w_, COMPUTE_DTYPE),
                            scale=jnp.asarray(invn[None, :], jnp.float32),
                            shift=jnp.asarray((b + (bb - m) * invn)[None, :], jnp.float32)))
        fc_rest_raw.append(dict(w=jnp.asarray(w_), b=jnp.asarray(bb), gamma=jnp.asarray(g),
                                beta=jnp.asarray(b), mean=jnp.asarray(m), var=jnp.asarray(v)))
        D_prev = Dn

    # ---- head (padded to a lane-dense output; wrapper slices back to num_classes) ----
    nc = num_classes
    nc_pad = ((nc + 127) // 128) * 128
    head_w = randn((D_prev, nc), 1.0 / np.sqrt(D_prev))
    head_b = randn((nc,), 0.1)
    Whp = np.zeros((D_prev, nc_pad), np.float32); Whp[:, :nc] = head_w
    bhp = np.zeros((1, nc_pad), np.float32);      bhp[0, :nc] = head_b
    head = dict(W=jnp.asarray(Whp, COMPUTE_DTYPE), b=jnp.asarray(bhp, jnp.float32))
    head_raw = dict(w=jnp.asarray(head_w), b=jnp.asarray(head_b))

    cfg = dict(input_channels=input_channels, input_size=(H0, W0), num_classes=nc,
               nc_pad=nc_pad, h_last=H_last, s_last=s_in, eps=eps)
    return dict(conv=conv_ops, conv_meta=conv_meta, fc0=fc0, fc_rest=fc_rest, head=head,
                raw=dict(conv=conv_raw, fc0=fc0_raw, fc_rest=fc_rest_raw, head=head_raw),
                cfg=cfg)


# ---------------------------------------------------------------------------
# Forward pass (wrapper: layout glue + single fused pallas_call)
# ---------------------------------------------------------------------------

def cnn_forward(x_nchw, params, batch_tile=None):
    cfg = params['cfg']
    conv_meta = params['conv_meta']
    N, C, H, W = x_nchw.shape
    assert C == cfg['input_channels'] and (H, W) == tuple(cfg['input_size']), \
        "TODO(synk): channel-repeat / bilinear-resize input adaptation not implemented"
    H0, W0 = cfg['input_size']

    # Batch tile: largest divisor of N up to 32 (amortizes the ~0.35us per-grid-step overhead
    # and fills the MXU); keep >=2 grid steps when N is large enough so v7x can shard the
    # "parallel" axis across its 2 TensorCores.  No silent quadratic fallback anymore: the
    # only bt-dependent operand is the tiny (bt, bt*H0) compaction matrix.
    if batch_tile is not None:
        bt = batch_tile
        assert N % bt == 0
    else:
        bt = min(N, 32)
        while N % bt:
            bt -= 1
        if N // bt == 1 and N % 2 == 0 and N >= 16:
            bt = N // 2
    n_steps = N // bt
    rows = bt * H0

    # NCHW -> stacked 2-D slab: rows = N*H (sublane/M axis), cols = W*C (lane axis,
    # channel fastest).  This is the only wrapper-side layout op.
    x = jnp.transpose(x_nchw, (0, 2, 3, 1)).reshape(N * H0, W0 * C).astype(COMPUTE_DTYPE)

    # Per-row "height index within image" (for the conv height-padding masks).
    hh = jnp.asarray((np.arange(rows) % H0)[:, None], jnp.float32)           # (bt*H0, 1)
    # Row-compaction matrix for the FC stage: picks row n*H0 of each image.
    Pm = np.zeros((bt, rows), np.float32)
    Pm[np.arange(bt), np.arange(bt) * H0] = 1.0
    Pm = jnp.asarray(Pm, COMPUTE_DTYPE)

    def const_spec(a):
        nd = a.ndim
        # constant across the grid -> single buffer (halves resident weight VMEM)
        return pl.BlockSpec(a.shape, lambda b: (0,) * nd, pipeline_mode=pl.Buffered(1))

    args = [x, hh]
    in_specs = [pl.BlockSpec((rows, W0 * C), lambda b: (b, 0)), const_spec(hh)]
    for cp in params['conv']:
        for a in (cp['W'], cp['scale'], cp['shift']):
            args.append(a)
            in_specs.append(const_spec(a))
    for a in (params['fc0']['W'], Pm, params['fc0']['scale'], params['fc0']['shift']):
        args.append(a)
        in_specs.append(const_spec(a))
    for fcp in params['fc_rest']:
        for a in (fcp['W'], fcp['scale'], fcp['shift']):
            args.append(a)
            in_specs.append(const_spec(a))
    for a in (params['head']['W'], params['head']['b']):
        args.append(a)
        in_specs.append(const_spec(a))

    nc_pad = cfg['nc_pad']
    kernel = make_fused_kernel(conv_meta, cfg['h_last'], cfg['s_last'], H0,
                               len(params['fc_rest']))

    out = pl.pallas_call(
        kernel,
        out_shape=jax.ShapeDtypeStruct((N, nc_pad), jnp.float32),
        grid=(n_steps,),
        in_specs=in_specs,
        out_specs=pl.BlockSpec((bt, nc_pad), lambda b: (b, 0)),
        compiler_params=pltpu.CompilerParams(dimension_semantics=("parallel",)),
    )(*args)
    # classification mode: [batch, num_classes] logits (lane padding sliced off)
    return out[:, :cfg['num_classes']]
    # TODO(synk): is_classification=False (regression squeeze) path not implemented.


# ---------------------------------------------------------------------------
# Pure-JAX f32 reference (PyTorch eval semantics) for validation
# ---------------------------------------------------------------------------

def cnn_reference(x_nchw, params):
    cfg = params['cfg']
    eps = cfg['eps']
    a = x_nchw.astype(jnp.float32)
    for lp in params['raw']['conv']:
        p, pad = lp['p'], lp['pad']
        a = lax.conv_general_dilated(a, lp['w'], window_strides=(1, 1),
                                     padding=((pad, pad), (pad, pad)),
                                     dimension_numbers=('NCHW', 'HWIO', 'NCHW'))
        a = a + lp['b'][None, :, None, None]
        inv = lp['gamma'] / jnp.sqrt(lp['var'] + eps)
        a = (a - lp['mean'][None, :, None, None]) * inv[None, :, None, None] \
            + lp['beta'][None, :, None, None]
        a = jnp.maximum(a, 0.0)
        n_, c_, h_, w_ = a.shape
        a = a.reshape(n_, c_, h_ // p, p, w_ // p, p).max(axis=(3, 5))
    h = a.reshape(a.shape[0], -1)
    rp = params['raw']['fc0']
    inv = rp['gamma'] / jnp.sqrt(rp['var'] + eps)
    h = jnp.maximum((h @ rp['w'] + rp['b'] - rp['mean']) * inv + rp['beta'], 0.0)
    for rp in params['raw']['fc_rest']:
        inv = rp['gamma'] / jnp.sqrt(rp['var'] + eps)
        h = jnp.maximum((h @ rp['w'] + rp['b'] - rp['mean']) * inv + rp['beta'], 0.0)
    hr = params['raw']['head']
    return h @ hr['w'] + hr['b']


# ---------------------------------------------------------------------------

if __name__ == "__main__":
    key = jax.random.PRNGKey(0)
    pkey, xkey, x2key = jax.random.split(key, 3)

    # Small config consistent with the module: 3 input channels, 16x16 spatial,
    # filters=[8,16], k=3, pool=2, fc_dims=[32], num_classes=5.
    params = make_params(pkey,
                         input_channels=3, input_size=(16, 16),
                         filters=(8, 16), kernel_sizes=(3, 3), pool_sizes=(2, 2),
                         fc_dims=(32,), num_classes=5)

    x = jax.random.normal(xkey, (2, 3, 16, 16), jnp.float32)   # NCHW, like PyTorch
    out = jax.block_until_ready(cnn_forward(x, params))
    assert out.shape == (2, 5), out.shape
    assert bool(jnp.all(jnp.isfinite(out)))
    ref = cnn_reference(x, params)
    err = float(jnp.max(jnp.abs(out - ref)))
    assert err < 0.1, f"max |kernel - reference| = {err}"

    # Larger batch: exercises bt=32 tiles and a multi-step "parallel" grid (both v7x cores).
    x2 = jax.random.normal(x2key, (64, 3, 16, 16), jnp.float32)
    out2 = jax.block_until_ready(cnn_forward(x2, params))
    assert out2.shape == (64, 5), out2.shape
    ref2 = cnn_reference(x2, params)
    err2 = float(jnp.max(jnp.abs(out2 - ref2)))
    assert err2 < 0.1, f"max |kernel - reference| = {err2}"

    print("KERNEL_OK")
</pallas_src>

<mosaic_0001>
module attributes {stable_mosaic.version = 11 : i64} {
  func.func @kernel(%arg0: i32, %arg1: memref<32x48xbf16, #tpu.memory_space<vmem>>, %arg2: memref<32x1xf32, #tpu.memory_space<vmem>>, %arg3: memref<3x48x128xbf16, #tpu.memory_space<vmem>>, %arg4: memref<1x128xf32, #tpu.memory_space<vmem>>, %arg5: memref<1x128xf32, #tpu.memory_space<vmem>>, %arg6: memref<3x128x128xbf16, #tpu.memory_space<vmem>>, %arg7: memref<1x128xf32, #tpu.memory_space<vmem>>, %arg8: memref<1x128xf32, #tpu.memory_space<vmem>>, %arg9: memref<4x128x32xbf16, #tpu.memory_space<vmem>>, %arg10: memref<2x32xbf16, #tpu.memory_space<vmem>>, %arg11: memref<1x32xf32, #tpu.memory_space<vmem>>, %arg12: memref<1x32xf32, #tpu.memory_space<vmem>>, %arg13: memref<32x128xbf16, #tpu.memory_space<vmem>>, %arg14: memref<1x128xf32, #tpu.memory_space<vmem>>, %arg15: memref<2x128xf32, #tpu.memory_space<vmem>>) attributes {dimension_semantics = [#tpu.dimension_semantics<parallel>], iteration_bounds = array<i64: 1>, scalar_prefetch = 0 : i64, scratch_operands = 0 : i64, tpu.core_type = #tpu.core_type<tc>, window_params = [{transform_indices = @transform_0, window_bounds = array<i64: 32, 48>}, {pipeline_mode = #tpu.pipeline_mode<synchronous>, transform_indices = @transform_1, window_bounds = array<i64: 32, 1>}, {pipeline_mode = #tpu.pipeline_mode<synchronous>, transform_indices = @transform_2, window_bounds = array<i64: 3, 48, 128>}, {pipeline_mode = #tpu.pipeline_mode<synchronous>, transform_indices = @transform_3, window_bounds = array<i64: 1, 128>}, {pipeline_mode = #tpu.pipeline_mode<synchronous>, transform_indices = @transform_4, window_bounds = array<i64: 1, 128>}, {pipeline_mode = #tpu.pipeline_mode<synchronous>, transform_indices = @transform_5, window_bounds = array<i64: 3, 128, 128>}, {pipeline_mode = #tpu.pipeline_mode<synchronous>, transform_indices = @transform_6, window_bounds = array<i64: 1, 128>}, {pipeline_mode = #tpu.pipeline_mode<synchronous>, transform_indices = @transform_7, window_bounds = array<i64: 1, 128>}, {pipeline_mode = #tpu.pipeline_mode<synchronous>, transform_indices = @transform_8, window_bounds = array<i64: 4, 128, 32>}, {pipeline_mode = #tpu.pipeline_mode<synchronous>, transform_indices = @transform_9, window_bounds = array<i64: 2, 32>}, {pipeline_mode = #tpu.pipeline_mode<synchronous>, transform_indices = @transform_10, window_bounds = array<i64: 1, 32>}, {pipeline_mode = #tpu.pipeline_mode<synchronous>, transform_indices = @transform_11, window_bounds = array<i64: 1, 32>}, {pipeline_mode = #tpu.pipeline_mode<synchronous>, transform_indices = @transform_12, window_bounds = array<i64: 32, 128>}, {pipeline_mode = #tpu.pipeline_mode<synchronous>, transform_indices = @transform_13, window_bounds = array<i64: 1, 128>}, {transform_indices = @transform_14, window_bounds = array<i64: 2, 128>}]} {
    %c0 = arith.constant 0 : index
    %c0_0 = arith.constant 0 : index
    %0 = vector.load %arg1[%c0, %c0_0] : memref<32x48xbf16, #tpu.memory_space<vmem>>, vector<32x48xbf16>
    %1 = arith.extf %0 : vector<32x48xbf16> to vector<32x48xf32>
    %c0_1 = arith.constant 0 : index
    %c0_2 = arith.constant 0 : index
    %2 = vector.load %arg2[%c0_1, %c0_2] : memref<32x1xf32, #tpu.memory_space<vmem>>, vector<32x1xf32>
    %c1_i32 = arith.constant 1 : i32
    %3 = tpu.dynamic_rotate %1 by %c1_i32 dim 0 : vector<32x48xf32>, i32 -> vector<32x48xf32>
    %cst = arith.constant 1.000000e+00 : f32
    %4 = vector.broadcast %cst : f32 to vector<32x1xf32>
    %5 = arith.cmpf oge, %2, %4 : vector<32x1xf32>
    %cst_3 = arith.constant 1.600000e+01 : f32
    %6 = vector.broadcast %cst_3 : f32 to vector<32x1xf32>
    %7 = arith.cmpf ole, %2, %6 : vector<32x1xf32>
    %8 = arith.andi %5, %7 : vector<32x1xi1>
    %cst_4 = arith.constant 0.000000e+00 : f32
    %9 = vector.shape_cast %8 : vector<32x1xi1> to vector<32x1xi1>
    %10 = vector.broadcast %9 : vector<32x1xi1> to vector<32x48xi1>
    %11 = vector.broadcast %cst_4 : f32 to vector<32x48xf32>
    %12 = arith.select %10, %3, %11 : vector<32x48xi1>, vector<32x48xf32>
    %13 = arith.truncf %12 : vector<32x48xf32> to vector<32x48xbf16>
    %c0_5 = arith.constant 0 : index
    %c0_6 = arith.constant 0 : index
    %c0_7 = arith.constant 0 : index
    %14 = vector.load %arg3[%c0_5, %c0_6, %c0_7] : memref<3x48x128xbf16, #tpu.memory_space<vmem>>, vector<1x48x128xbf16>
    %15 = vector.shape_cast %14 : vector<1x48x128xbf16> to vector<48x128xbf16>
    %cst_8 = arith.constant dense<0.000000e+00> : vector<32x128xf32>
    %16 = tpu.matmul %13, %15, %cst_8 {dimension_numbers = #tpu.dot_dimension_numbers<[1], [0], [0], [1], [0, 0, 1, 1], [], []>} : vector<32x48xbf16>, vector<48x128xbf16>, vector<32x128xf32> -> vector<32x128xf32>
    %17 = arith.truncf %1 : vector<32x48xf32> to vector<32x48xbf16>
    %c1 = arith.constant 1 : index
    %c0_9 = arith.constant 0 : index
    %c0_10 = arith.constant 0 : index
    %18 = vector.load %arg3[%c1, %c0_9, %c0_10] : memref<3x48x128xbf16, #tpu.memory_space<vmem>>, vector<1x48x128xbf16>
    %19 = vector.shape_cast %18 : vector<1x48x128xbf16> to vector<48x128xbf16>
    %cst_11 = arith.constant dense<0.000000e+00> : vector<32x128xf32>
    %20 = tpu.matmul %17, %19, %cst_11 {dimension_numbers = #tpu.dot_dimension_numbers<[1], [0], [0], [1], [0, 0, 1, 1], [], []>} : vector<32x48xbf16>, vector<48x128xbf16>, vector<32x128xf32> -> vector<32x128xf32>
    %21 = arith.addf %16, %20 : vector<32x128xf32>
    %c31_i32 = arith.constant 31 : i32
    %22 = tpu.dynamic_rotate %1 by %c31_i32 dim 0 : vector<32x48xf32>, i32 -> vector<32x48xf32>
    %cst_12 = arith.constant -1.000000e+00 : f32
    %23 = vector.broadcast %cst_12 : f32 to vector<32x1xf32>
    %24 = arith.cmpf oge, %2, %23 : vector<32x1xf32>
    %cst_13 = arith.constant 1.400000e+01 : f32
    %25 = vector.broadcast %cst_13 : f32 to vector<32x1xf32>
    %26 = arith.cmpf ole, %2, %25 : vector<32x1xf32>
    %27 = arith.andi %24, %26 : vector<32x1xi1>
    %cst_14 = arith.constant 0.000000e+00 : f32
    %28 = vector.shape_cast %27 : vector<32x1xi1> to vector<32x1xi1>
    %29 = vector.broadcast %28 : vector<32x1xi1> to vector<32x48xi1>
    %30 = vector.broadcast %cst_14 : f32 to vector<32x48xf32>
    %31 = arith.select %29, %22, %30 : vector<32x48xi1>, vector<32x48xf32>
    %32 = arith.truncf %31 : vector<32x48xf32> to vector<32x48xbf16>
    %c2 = arith.constant 2 : index
    %c0_15 = arith.constant 0 : index
    %c0_16 = arith.constant 0 : index
    %33 = vector.load %arg3[%c2, %c0_15, %c0_16] : memref<3x48x128xbf16, #tpu.memory_space<vmem>>, vector<1x48x128xbf16>
    %34 = vector.shape_cast %33 : vector<1x48x128xbf16> to vector<48x128xbf16>
    %cst_17 = arith.constant dense<0.000000e+00> : vector<32x128xf32>
    %35 = tpu.matmul %32, %34, %cst_17 {dimension_numbers = #tpu.dot_dimension_numbers<[1], [0], [0], [1], [0, 0, 1, 1], [], []>} : vector<32x48xbf16>, vector<48x128xbf16>, vector<32x128xf32> -> vector<32x128xf32>
    %36 = arith.addf %21, %35 : vector<32x128xf32>
    %c0_18 = arith.constant 0 : index
    %c0_19 = arith.constant 0 : index
    %37 = vector.load %arg4[%c0_18, %c0_19] : memref<1x128xf32, #tpu.memory_space<vmem>>, vector<1x128xf32>
    %38 = vector.broadcast %37 : vector<1x128xf32> to vector<32x128xf32>
    %39 = arith.mulf %36, %38 : vector<32x128xf32>
    %c0_20 = arith.constant 0 : index
    %c0_21 = arith.constant 0 : index
    %40 = vector.load %arg5[%c0_20, %c0_21] : memref<1x128xf32, #tpu.memory_space<vmem>>, vector<1x128xf32>
    %41 = vector.broadcast %40 : vector<1x128xf32> to vector<32x128xf32>
    %42 = arith.addf %39, %41 : vector<32x128xf32>
    %cst_22 = arith.constant 0.000000e+00 : f32
    %43 = vector.broadcast %cst_22 : f32 to vector<32x128xf32>
    %44 = arith.maximumf %42, %43 : vector<32x128xf32>
    %c31_i32_23 = arith.constant 31 : i32
    %45 = tpu.dynamic_rotate %44 by %c31_i32_23 dim 0 : vector<32x128xf32>, i32 -> vector<32x128xf32>
    %46 = arith.maximumf %44, %45 : vector<32x128xf32>
    %c120_i32 = arith.constant 120 : i32
    %47 = tpu.dynamic_rotate %46 by %c120_i32 dim 1 : vector<32x128xf32>, i32 -> vector<32x128xf32>
    %48 = arith.maximumf %46, %47 : vector<32x128xf32>
    %c2_i32 = arith.constant 2 : i32
    %49 = tpu.dynamic_rotate %48 by %c2_i32 dim 0 : vector<32x128xf32>, i32 -> vector<32x128xf32>
    %cst_24 = arith.constant 2.000000e+00 : f32
    %50 = vector.broadcast %cst_24 : f32 to vector<32x1xf32>
    %51 = arith.cmpf oge, %2, %50 : vector<32x1xf32>
    %cst_25 = arith.constant 1.700000e+01 : f32
    %52 = vector.broadcast %cst_25 : f32 to vector<32x1xf32>
    %53 = arith.cmpf ole, %2, %52 : vector<32x1xf32>
    %54 = arith.andi %51, %53 : vector<32x1xi1>
    %cst_26 = arith.constant 0.000000e+00 : f32
    %55 = vector.shape_cast %54 : vector<32x1xi1> to vector<32x1xi1>
    %56 = vector.broadcast %55 : vector<32x1xi1> to vector<32x128xi1>
    %57 = vector.broadcast %cst_26 : f32 to vector<32x128xf32>
    %58 = arith.select %56, %49, %57 : vector<32x128xi1>, vector<32x128xf32>
    %59 = arith.truncf %58 : vector<32x128xf32> to vector<32x128xbf16>
    %c0_27 = arith.constant 0 : index
    %c0_28 = arith.constant 0 : index
    %c0_29 = arith.constant 0 : index
    %60 = vector.load %arg6[%c0_27, %c0_28, %c0_29] : memref<3x128x128xbf16, #tpu.memory_space<vmem>>, vector<1x128x128xbf16>
    %61 = vector.shape_cast %60 : vector<1x128x128xbf16> to vector<128x128xbf16>
    %cst_30 = arith.constant dense<0.000000e+00> : vector<32x128xf32>
    %62 = tpu.matmul %59, %61, %cst_30 {dimension_numbers = #tpu.dot_dimension_numbers<[1], [0], [0], [1], [0, 0, 1, 1], [], []>} : vector<32x128xbf16>, vector<128x128xbf16>, vector<32x128xf32> -> vector<32x128xf32>
    %63 = arith.truncf %48 : vector<32x128xf32> to vector<32x128xbf16>
    %c1_31 = arith.constant 1 : index
    %c0_32 = arith.constant 0 : index
    %c0_33 = arith.constant 0 : index
    %64 = vector.load %arg6[%c1_31, %c0_32, %c0_33] : memref<3x128x128xbf16, #tpu.memory_space<vmem>>, vector<1x128x128xbf16>
    %65 = vector.shape_cast %64 : vector<1x128x128xbf16> to vector<128x128xbf16>
    %cst_34 = arith.constant dense<0.000000e+00> : vector<32x128xf32>
    %66 = tpu.matmul %63, %65, %cst_34 {dimension_numbers = #tpu.dot_dimension_numbers<[1], [0], [0], [1], [0, 0, 1, 1], [], []>} : vector<32x128xbf16>, vector<128x128xbf16>, vector<32x128xf32> -> vector<32x128xf32>
    %67 = arith.addf %62, %66 : vector<32x128xf32>
    %c30_i32 = arith.constant 30 : i32
    %68 = tpu.dynamic_rotate %48 by %c30_i32 dim 0 : vector<32x128xf32>, i32 -> vector<32x128xf32>
    %cst_35 = arith.constant -2.000000e+00 : f32
    %69 = vector.broadcast %cst_35 : f32 to vector<32x1xf32>
    %70 = arith.cmpf oge, %2, %69 : vector<32x1xf32>
    %cst_36 = arith.constant 1.300000e+01 : f32
    %71 = vector.broadcast %cst_36 : f32 to vector<32x1xf32>
    %72 = arith.cmpf ole, %2, %71 : vector<32x1xf32>
    %73 = arith.andi %70, %72 : vector<32x1xi1>
    %cst_37 = arith.constant 0.000000e+00 : f32
    %74 = vector.shape_cast %73 : vector<32x1xi1> to vector<32x1xi1>
    %75 = vector.broadcast %74 : vector<32x1xi1> to vector<32x128xi1>
    %76 = vector.broadcast %cst_37 : f32 to vector<32x128xf32>
    %77 = arith.select %75, %68, %76 : vector<32x128xi1>, vector<32x128xf32>
    %78 = arith.truncf %77 : vector<32x128xf32> to vector<32x128xbf16>
    %c2_38 = arith.constant 2 : index
    %c0_39 = arith.constant 0 : index
    %c0_40 = arith.constant 0 : index
    %79 = vector.load %arg6[%c2_38, %c0_39, %c0_40] : memref<3x128x128xbf16, #tpu.memory_space<vmem>>, vector<1x128x128xbf16>
    %80 = vector.shape_cast %79 : vector<1x128x128xbf16> to vector<128x128xbf16>
    %cst_41 = arith.constant dense<0.000000e+00> : vector<32x128xf32>
    %81 = tpu.matmul %78, %80, %cst_41 {dimension_numbers = #tpu.dot_dimension_numbers<[1], [0], [0], [1], [0, 0, 1, 1], [], []>} : vector<32x128xbf16>, vector<128x128xbf16>, vector<32x128xf32> -> vector<32x128xf32>
    %82 = arith.addf %67, %81 : vector<32x128xf32>
    %c0_42 = arith.constant 0 : index
    %c0_43 = arith.constant 0 : index
    %83 = vector.load %arg7[%c0_42, %c0_43] : memref<1x128xf32, #tpu.memory_space<vmem>>, vector<1x128xf32>
    %84 = vector.broadcast %83 : vector<1x128xf32> to vector<32x128xf32>
    %85 = arith.mulf %82, %84 : vector<32x128xf32>
    %c0_44 = arith.constant 0 : index
    %c0_45 = arith.constant 0 : index
    %86 = vector.load %arg8[%c0_44, %c0_45] : memref<1x128xf32, #tpu.memory_space<vmem>>, vector<1x128xf32>
    %87 = vector.broadcast %86 : vector<1x128xf32> to vector<32x128xf32>
    %88 = arith.addf %85, %87 : vector<32x128xf32>
    %cst_46 = arith.constant 0.000000e+00 : f32
    %89 = vector.broadcast %cst_46 : f32 to vector<32x128xf32>
    %90 = arith.maximumf %88, %89 : vector<32x128xf32>
    %c30_i32_47 = arith.constant 30 : i32
    %91 = tpu.dynamic_rotate %90 by %c30_i32_47 dim 0 : vector<32x128xf32>, i32 -> vector<32x128xf32>
    %92 = arith.maximumf %90, %91 : vector<32x128xf32>
    %c112_i32 = arith.constant 112 : i32
    %93 = tpu.dynamic_rotate %92 by %c112_i32 dim 1 : vector<32x128xf32>, i32 -> vector<32x128xf32>
    %94 = arith.maximumf %92, %93 : vector<32x128xf32>
    %95 = arith.truncf %94 : vector<32x128xf32> to vector<32x128xbf16>
    %c0_48 = arith.constant 0 : index
    %c0_49 = arith.constant 0 : index
    %c0_50 = arith.constant 0 : index
    %96 = vector.load %arg9[%c0_48, %c0_49, %c0_50] : memref<4x128x32xbf16, #tpu.memory_space<vmem>>, vector<1x128x32xbf16>
    %97 = vector.shape_cast %96 : vector<1x128x32xbf16> to vector<128x32xbf16>
    %cst_51 = arith.constant dense<0.000000e+00> : vector<32x32xf32>
    %98 = tpu.matmul %95, %97, %cst_51 {dimension_numbers = #tpu.dot_dimension_numbers<[1], [0], [0], [1], [0, 0, 1, 1], [], []>} : vector<32x128xbf16>, vector<128x32xbf16>, vector<32x32xf32> -> vector<32x32xf32>
    %c28_i32 = arith.constant 28 : i32
    %99 = tpu.dynamic_rotate %94 by %c28_i32 dim 0 : vector<32x128xf32>, i32 -> vector<32x128xf32>
    %100 = arith.truncf %99 : vector<32x128xf32> to vector<32x128xbf16>
    %c1_52 = arith.constant 1 : index
    %c0_53 = arith.constant 0 : index
    %c0_54 = arith.constant 0 : index
    %101 = vector.load %arg9[%c1_52, %c0_53, %c0_54] : memref<4x128x32xbf16, #tpu.memory_space<vmem>>, vector<1x128x32xbf16>
    %102 = vector.shape_cast %101 : vector<1x128x32xbf16> to vector<128x32xbf16>
    %cst_55 = arith.constant dense<0.000000e+00> : vector<32x32xf32>
    %103 = tpu.matmul %100, %102, %cst_55 {dimension_numbers = #tpu.dot_dimension_numbers<[1], [0], [0], [1], [0, 0, 1, 1], [], []>} : vector<32x128xbf16>, vector<128x32xbf16>, vector<32x32xf32> -> vector<32x32xf32>
    %104 = arith.addf %98, %103 : vector<32x32xf32>
    %c24_i32 = arith.constant 24 : i32
    %105 = tpu.dynamic_rotate %94 by %c24_i32 dim 0 : vector<32x128xf32>, i32 -> vector<32x128xf32>
    %106 = arith.truncf %105 : vector<32x128xf32> to vector<32x128xbf16>
    %c2_56 = arith.constant 2 : index
    %c0_57 = arith.constant 0 : index
    %c0_58 = arith.constant 0 : index
    %107 = vector.load %arg9[%c2_56, %c0_57, %c0_58] : memref<4x128x32xbf16, #tpu.memory_space<vmem>>, vector<1x128x32xbf16>
    %108 = vector.shape_cast %107 : vector<1x128x32xbf16> to vector<128x32xbf16>
    %cst_59 = arith.constant dense<0.000000e+00> : vector<32x32xf32>
    %109 = tpu.matmul %106, %108, %cst_59 {dimension_numbers = #tpu.dot_dimension_numbers<[1], [0], [0], [1], [0, 0, 1, 1], [], []>} : vector<32x128xbf16>, vector<128x32xbf16>, vector<32x32xf32> -> vector<32x32xf32>
    %110 = arith.addf %104, %109 : vector<32x32xf32>
    %c20_i32 = arith.constant 20 : i32
    %111 = tpu.dynamic_rotate %94 by %c20_i32 dim 0 : vector<32x128xf32>, i32 -> vector<32x128xf32>
    %112 = arith.truncf %111 : vector<32x128xf32> to vector<32x128xbf16>
    %c3 = arith.constant 3 : index
    %c0_60 = arith.constant 0 : index
    %c0_61 = arith.constant 0 : index
    %113 = vector.load %arg9[%c3, %c0_60, %c0_61] : memref<4x128x32xbf16, #tpu.memory_space<vmem>>, vector<1x128x32xbf16>
    %114 = vector.shape_cast %113 : vector<1x128x32xbf16> to vector<128x32xbf16>
    %cst_62 = arith.constant dense<0.000000e+00> : vector<32x32xf32>
    %115 = tpu.matmul %112, %114, %cst_62 {dimension_numbers = #tpu.dot_dimension_numbers<[1], [0], [0], [1], [0, 0, 1, 1], [], []>} : vector<32x128xbf16>, vector<128x32xbf16>, vector<32x32xf32> -> vector<32x32xf32>
    %116 = arith.addf %110, %115 : vector<32x32xf32>
    %c0_63 = arith.constant 0 : index
    %c0_64 = arith.constant 0 : index
    %117 = vector.load %arg10[%c0_63, %c0_64] : memref<2x32xbf16, #tpu.memory_space<vmem>>, vector<2x32xbf16>
    %118 = arith.truncf %116 : vector<32x32xf32> to vector<32x32xbf16>
    %cst_65 = arith.constant dense<0.000000e+00> : vector<2x32xf32>
    %119 = tpu.matmul %117, %118, %cst_65 {dimension_numbers = #tpu.dot_dimension_numbers<[1], [0], [0], [1], [0, 0, 1, 1], [], []>} : vector<2x32xbf16>, vector<32x32xbf16>, vector<2x32xf32> -> vector<2x32xf32>
    %c0_66 = arith.constant 0 : index
    %c0_67 = arith.constant 0 : index
    %120 = vector.load %arg11[%c0_66, %c0_67] : memref<1x32xf32, #tpu.memory_space<vmem>>, vector<1x32xf32>
    %121 = vector.broadcast %120 : vector<1x32xf32> to vector<2x32xf32>
    %122 = arith.mulf %119, %121 : vector<2x32xf32>
    %c0_68 = arith.constant 0 : index
    %c0_69 = arith.constant 0 : index
    %123 = vector.load %arg12[%c0_68, %c0_69] : memref<1x32xf32, #tpu.memory_space<vmem>>, vector<1x32xf32>
    %124 = vector.broadcast %123 : vector<1x32xf32> to vector<2x32xf32>
    %125 = arith.addf %122, %124 : vector<2x32xf32>
    %cst_70 = arith.constant 0.000000e+00 : f32
    %126 = vector.broadcast %cst_70 : f32 to vector<2x32xf32>
    %127 = arith.maximumf %125, %126 : vector<2x32xf32>
    %128 = arith.truncf %127 : vector<2x32xf32> to vector<2x32xbf16>
    %c0_71 = arith.constant 0 : index
    %c0_72 = arith.constant 0 : index
    %129 = vector.load %arg13[%c0_71, %c0_72] : memref<32x128xbf16, #tpu.memory_space<vmem>>, vector<32x128xbf16>
    %cst_73 = arith.constant dense<0.000000e+00> : vector<2x128xf32>
    %130 = tpu.matmul %128, %129, %cst_73 {dimension_numbers = #tpu.dot_dimension_numbers<[1], [0], [0], [1], [0, 0, 1, 1], [], []>} : vector<2x32xbf16>, vector<32x128xbf16>, vector<2x128xf32> -> vector<2x128xf32>
    %c0_74 = arith.constant 0 : index
    %c0_75 = arith.constant 0 : index
    %131 = vector.load %arg14[%c0_74, %c0_75] : memref<1x128xf32, #tpu.memory_space<vmem>>, vector<1x128xf32>
    %132 = vector.broadcast %131 : vector<1x128xf32> to vector<2x128xf32>
    %133 = arith.addf %130, %132 : vector<2x128xf32>
    %c0_76 = arith.constant 0 : index
    %c0_77 = arith.constant 0 : index
    %134 = vector.load %arg15[%c0_76, %c0_77] : memref<2x128xf32, #tpu.memory_space<vmem>>, vector<2x128xf32>
    tpu.vector_store %arg15[%c0_76, %c0_77], %133 {strides = array<i32>} : memref<2x128xf32, #tpu.memory_space<vmem>>, vector<2x128xf32>,
    return
  }
  func.func @transform_0(%arg0: i32) -> (i32, i32) {
    %c0_i32 = arith.constant 0 : i32
    %c0_i32_0 = arith.constant 0 : i32
    return %arg0, %c0_i32 : i32, i32
  }
  func.func @transform_1(%arg0: i32) -> (i32, i32) {
    %c0_i32 = arith.constant 0 : i32
    %c0_i32_0 = arith.constant 0 : i32
    %c0_i32_1 = arith.constant 0 : i32
    return %c0_i32, %c0_i32_0 : i32, i32
  }
  func.func @transform_2(%arg0: i32) -> (i32, i32, i32) {
    %c0_i32 = arith.constant 0 : i32
    %c0_i32_0 = arith.constant 0 : i32
    %c0_i32_1 = arith.constant 0 : i32
    %c0_i32_2 = arith.constant 0 : i32
    return %c0_i32, %c0_i32_0, %c0_i32_1 : i32, i32, i32
  }
  func.func @transform_3(%arg0: i32) -> (i32, i32) {
    %c0_i32 = arith.constant 0 : i32
    %c0_i32_0 = arith.constant 0 : i32
    %c0_i32_1 = arith.constant 0 : i32
    return %c0_i32, %c0_i32_0 : i32, i32
  }
  func.func @transform_4(%arg0: i32) -> (i32, i32) {
    %c0_i32 = arith.constant 0 : i32
    %c0_i32_0 = arith.constant 0 : i32
    %c0_i32_1 = arith.constant 0 : i32
    return %c0_i32, %c0_i32_0 : i32, i32
  }
  func.func @transform_5(%arg0: i32) -> (i32, i32, i32) {
    %c0_i32 = arith.constant 0 : i32
    %c0_i32_0 = arith.constant 0 : i32
    %c0_i32_1 = arith.constant 0 : i32
    %c0_i32_2 = arith.constant 0 : i32
    return %c0_i32, %c0_i32_0, %c0_i32_1 : i32, i32, i32
  }
  func.func @transform_6(%arg0: i32) -> (i32, i32) {
    %c0_i32 = arith.constant 0 : i32
    %c0_i32_0 = arith.constant 0 : i32
    %c0_i32_1 = arith.constant 0 : i32
    return %c0_i32, %c0_i32_0 : i32, i32
  }
  func.func @transform_7(%arg0: i32) -> (i32, i32) {
    %c0_i32 = arith.constant 0 : i32
    %c0_i32_0 = arith.constant 0 : i32
    %c0_i32_1 = arith.constant 0 : i32
    return %c0_i32, %c0_i32_0 : i32, i32
  }
  func.func @transform_8(%arg0: i32) -> (i32, i32, i32) {
    %c0_i32 = arith.constant 0 : i32
    %c0_i32_0 = arith.constant 0 : i32
    %c0_i32_1 = arith.constant 0 : i32
    %c0_i32_2 = arith.constant 0 : i32
    return %c0_i32, %c0_i32_0, %c0_i32_1 : i32, i32, i32
  }
  func.func @transform_9(%arg0: i32) -> (i32, i32) {
    %c0_i32 = arith.constant 0 : i32
    %c0_i32_0 = arith.constant 0 : i32
    %c0_i32_1 = arith.constant 0 : i32
    return %c0_i32, %c0_i32_0 : i32, i32
  }
  func.func @transform_10(%arg0: i32) -> (i32, i32) {
    %c0_i32 = arith.constant 0 : i32
    %c0_i32_0 = arith.constant 0 : i32
    %c0_i32_1 = arith.constant 0 : i32
    return %c0_i32, %c0_i32_0 : i32, i32
  }
  func.func @transform_11(%arg0: i32) -> (i32, i32) {
    %c0_i32 = arith.constant 0 : i32
    %c0_i32_0 = arith.constant 0 : i32
    %c0_i32_1 = arith.constant 0 : i32
    return %c0_i32, %c0_i32_0 : i32, i32
  }
  func.func @transform_12(%arg0: i32) -> (i32, i32) {
    %c0_i32 = arith.constant 0 : i32
    %c0_i32_0 = arith.constant 0 : i32
    %c0_i32_1 = arith.constant 0 : i32
    return %c0_i32, %c0_i32_0 : i32, i32
  }
  func.func @transform_13(%arg0: i32) -> (i32, i32) {
    %c0_i32 = arith.constant 0 : i32
    %c0_i32_0 = arith.constant 0 : i32
    %c0_i32_1 = arith.constant 0 : i32
    return %c0_i32, %c0_i32_0 : i32, i32
  }
  func.func @transform_14(%arg0: i32) -> (i32, i32) {
    %c0_i32 = arith.constant 0 : i32
    %c0_i32_0 = arith.constant 0 : i32
    return %arg0, %c0_i32 : i32, i32
  }
}

</mosaic_0001>

<bundles_post_ra>
// kernel: tpu_custom_call.1
= control target key start
LH: loop header
LB: loop body
LE: loop exit
PB: predicated region body
PF: predicated region fallthrough
CT: control target
= control target key end

     0   :  { %v65_v3 = vlaneseq  ;;  %v2164_v4 = vmov 0   ;;  %s2671_s0 = inlined_call_operand.vmem [shape: bf16[32,48], index: 0, kind: input, shape index: {}]   ;;  %s2672_s1 = inlined_call_operand.vmem [shape: f32[32,1], index: 1, kind: input, shape index: {}]   ;;  %s2673_s2 = inlined_call_operand.vmem [shape: bf16[3,48,128], index: 2, kind: input, shape index: {}]   ;;  %s2674_s3 = inlined_call_operand.vmem [shape: f32[1,128], index: 3, kind: input, shape index: {}]   ;;  %s2675_s4 = inlined_call_operand.vmem [shape: f32[1,128], index: 4, kind: input, shape index: {}]   ;;  %s2676_s5 = inlined_call_operand.vmem [shape: bf16[3,128,128], index: 5, kind: input, shape index: {}]   ;;  %s2677_s6 = inlined_call_operand.vmem [shape: f32[1,128], index: 6, kind: input, shape index: {}]   ;;  %s2678_s7 = inlined_call_operand.vmem [shape: f32[1,128], index: 7, kind: input, shape index: {}]   ;;  %s2679_s8 = inlined_call_operand.vmem [shape: bf16[4,128,32], index: 8, kind: input, shape index: {}]   ;;  %s2680_s9 = inlined_call_operand.vmem [shape: bf16[2,32], index: 9, kind: input, shape index: {}]   ;;  %s2681_s10 = inlined_call_operand.vmem [shape: f32[1,32], index: 10, kind: input, shape index: {}]   ;;  %s2682_s11 = inlined_call_operand.vmem [shape: f32[1,32], index: 11, kind: input, shape index: {}]   ;;  %s2683_s12 = inlined_call_operand.vmem [shape: bf16[32,128], index: 12, kind: input, shape index: {}]   ;;  %s2684_s13 = inlined_call_operand.vmem [shape: f32[1,128], index: 13, kind: input, shape index: {}]   ;;  %s2685_s14 = inlined_call_operand.hbm [shape: f32[2,128], index: 14, kind: output, shape index: {}]  }
   0x1   :  { %v2248_v0 = vld [vmem:[%s2672_s1 + $0x10] sm:$0xff]  ;;  %v2253_v1 = vld [vmem:[%s2672_s1] sm:$0xff]  ;;  %v2258_v2 = vld [vmem:[%s2672_s1 + $0x18] sm:$0xff]  ;;  %2050 = vset.pattern.permute.xlu1 %v2164_v4  ;;  %2049 = vset.pattern.permute.xlu0 %v2164_v4 }
   0x2   :  { %vm74_vm0 = vcmp.ge.f32.partialorder %v2248_v0, 1.0  ;;  %vm78_vm1 = vcmp.le.f32.partialorder %v2248_v0, 16.0  ;;  %vm72_vm2 = vcmp.ge.f32.partialorder %v2253_v1, 1.0  ;;  %vm76_vm3 = vcmp.le.f32.partialorder %v2253_v1, 16.0  ;;  %v2269_v5 = vld [vmem:[%s2672_s1 + $0x8] sm:$0xff]  ;;  %v2072_v10 = vld [vmem:[%s2673_s2 + $0x20] sm:$0xff]  }
   0x3   :  { %v2071_v6 = vld [vmem:[%s2673_s2 + $0x28] sm:$0xff]   ;;  %vm82_vm4 = vmand %vm74_vm0, %vm78_vm1  ;;  %vm75_vm5 = vcmp.ge.f32.partialorder %v2258_v2, 1.0  ;;  %vm79_vm6 = vcmp.le.f32.partialorder %v2258_v2, 16.0  ;;  %vm73_vm7 = vcmp.ge.f32.partialorder %v2269_v5, 1.0  ;;  %vm77_vm8 = vcmp.le.f32.partialorder %v2269_v5, 16.0  ;;  %v2073_v13 = vld [vmem:[%s2673_s2 + $0x18] sm:$0xff]  }
   0x4   :  { %v86_v7 = vsel %vm82_vm4, 1, %v2164_v4  ;;  %vm80_vm9 = vmand %vm72_vm2, %vm76_vm3  ;;  %vm290_vm10 = vcmp.ge.f32.partialorder %v2269_v5, -1.0  ;;  %vm294_vm11 = vcmp.le.f32.partialorder %v2269_v5, 14.0  ;;  %vm289_vm12 = vcmp.ge.f32.partialorder %v2253_v1, -1.0  ;;  %1857 = vmatprep.subr.bf16.mxu0 %v2071_v6  ;;  %v2074_v14 = vld [vmem:[%s2673_s2 + $0x10] sm:$0xff]   ;;  %v49_v17 = vld [vmem:[%s2671_s0] sm:$0xff]  }
   0x5   :  { %95 = vperm.xlu1 %2050, %v86_v7   ;;  %v84_v8 = vsel %vm80_vm9, 1, %v2164_v4  ;;  %vm83_vm13 = vmand %vm75_vm5, %vm79_vm6  ;;  %vm293_vm14 = vcmp.le.f32.partialorder %v2253_v1, 14.0  ;;  %vm292_vm15 = vcmp.ge.f32.partialorder %v2258_v2, -1.0  ;;  %vm296_vm0 = vcmp.le.f32.partialorder %v2258_v2, 14.0  ;;  %1858 = vmatpush3.bf16.msra.mxu0 %v2071_v6  ;;  %v51_v18 = vld [vmem:[%s2671_s0 + $0x8] sm:$0xff]   ;;  %v2078_v26 = vld [vmem:[%s2673_s2 + $0x40] sm:$0xff]  }
   0x6   :  { %89 = vperm.xlu0 %2049, %v84_v8   ;;  %v87_v9 = vsel %vm83_vm13, 1, %v2164_v4  ;;  %vm81_vm1 = vmand %vm73_vm7, %vm77_vm8  ;;  %vm291_vm2 = vcmp.ge.f32.partialorder %v2248_v0, -1.0  ;;  %vm295_vm3 = vcmp.le.f32.partialorder %v2248_v0, 14.0  ;;  %v2301_v12 = vshrl.u32 %v65_v3, 7  ;;  %1859 = vmatprep.subr.bf16.mxu0 %v2072_v10  ;;  %v2077_v22 = vld [vmem:[%s2673_s2 + $0x8] sm:$0xff]   ;;  %v2079_v33 = vld [vmem:[%s2673_s2] sm:$0xff]  }
   0x7   :  { %v85_v11 = vsel %vm81_vm1, 1, %v2164_v4  ;;  %vm298_vm4 = vmand %vm290_vm10, %vm294_vm11  ;;  %vm151_vm7 = vcmask 392192   ;;  %1867 = vmatprep.subr.bf16.mxu1 %v2074_v14  ;;  %v53_v20 = vunpack.c.l.bf16 %v49_v17  ;;  %v54_v21 = vunpack.c.h.bf16 %v49_v17  ;;  %v2080_v35 = vld [vmem:[%s2673_s2 + $0x38] sm:$0xff]   ;;  %v2081_v41 = vld [vmem:[%s2673_s2 + $0x30] sm:$0xff]  }
   0x8   :  { %vm297_vm5 = vmand %vm289_vm12, %vm293_vm14  ;;  %v302_v15 = vsel %vm298_vm4, 1, %v2164_v4  ;;  %vm67_vm9 = vcmp.lt.s32.totalorder %v2301_v12, 1  ;;  %vm284_vm10 = vcmp.lt.s32.totalorder %v2301_v12, 7  ;;  %1868 = vmatpush3.bf16.msra.mxu1 %v2074_v14  ;;  %v55_v24 = vunpack.c.l.bf16 %v51_v18  ;;  %1863 = vmatprep.mubr.msk.bf16.mxu0 %vm151_vm7, %v49_v17 }
   0x9   :  { %98 = vperm.xlu1 %2050, %v87_v9   ;;  %vm300_vm6 = vmand %vm292_vm15, %vm296_vm0  ;;  %1860 = vmatpush3.bf16.msra.mxu0 %v2072_v10  ;;  %v301_v16 = vsel %vm297_vm5, 1, %v2164_v4  ;;  %v56_v25 = vunpack.c.h.bf16 %v51_v18  ;;  %v61_v27 = vrot.slane %v53_v20, 7  ;;  %v62_v28 = vrot.slane %v54_v21, 7 }
   0xa   :  { %92 = vperm.xlu0 %2049, %v85_v11   ;;  %vm299_vm8 = vmand %vm291_vm2, %vm295_vm3  ;;  %1861 = vmatprep.subr.bf16.mxu0 %v2073_v13  ;;  %v304_v19 = vsel %vm300_vm6, 1, %v2164_v4  ;;  %v280_v29 = vrot.slane %v53_v20, 1  ;;  %v281_v30 = vrot.slane %v54_v21, 1  ;;  %v63_v31 = vrot.slane %v55_v24, 7 }
   0xb   :  { %v303_v23 = vsel %vm299_vm8, 1, %v2164_v4  ;;  %v64_v32 = vrot.slane %v56_v25, 7  ;;  %v282_v34 = vrot.slane %v55_v24, 1  ;;  %1869 = vmatprep.subr.bf16.mxu1 %v2077_v22  ;;  %v283_v36 = vrot.slane %v56_v25, 1 }
   0xc   :  { %v69_v37 = vsel %vm67_vm9, %v62_v28, %v63_v31  ;;  %1870 = vmatpush3.bf16.msra.mxu1 %v2077_v22 }
   0xd   :  { %309 = vperm.xlu1 %2050, %v302_v15   ;;  %1862 = vmatpush3.bf16.msra.mxu0 %v2073_v13  ;;  %v71_v38 = vsel %vm67_vm9, %v64_v32, %v61_v27  ;;  %v286_v39 = vsel %vm284_vm10, %v281_v30, %v282_v34  ;;  %v288_v40 = vsel %vm284_vm10, %v283_v36, %v280_v29 }
   0xe   :  { %306 = vperm.xlu0 %2049, %v301_v16   ;;  %1877 = vmatprep.subr.bf16.mxu0 %v2078_v26 }
   0xf   :  { %1871 = vmatprep.subr.bf16.mxu1 %v2079_v33 }
  0x10   :  { %1864 = vmatmul.mubr.msk.bf16.vlgmr.msra.gmra.mxu0 %vm151_vm7, %v51_v18  ;;  %1872 = vmatpush3.bf16.msra.mxu1 %v2079_v33 }
  0x11   :  { %315 = vperm.xlu1 %2050, %v304_v19   ;;  %1878 = vmatpush3.bf16.msra.mxu0 %v2078_v26 }
  0x12   :  { %312 = vperm.xlu0 %2049, %v303_v23   ;;  %1879 = vmatprep.subr.bf16.mxu0 %v2080_v35 }
  0x15   :  { %1880 = vmatpush3.bf16.msra.mxu0 %v2080_v35 }
  0x16   :  { %1881 = vmatprep.subr.bf16.mxu0 %v2081_v41 }
  0x19   :  { %1882 = vmatpush3.bf16.msra.mxu0 %v2081_v41 }
  0x1a   :  { %19 = vsyncpa [#allocation3], 0  ;;  %v68_v44 = vsel %vm67_vm9, %v63_v31, %v64_v32  ;;  %v70_v46 = vsel %vm67_vm9, %v61_v27, %v62_v28  ;;  %v287_v54 = vsel %vm284_vm10, %v280_v29, %v281_v30  ;;  %v285_v61 = vsel %vm284_vm10, %v282_v34, %v283_v36  ;;  %v2082_v7 = vld [vmem:[%s2676_s5 + $0x78] sm:$0xff]   ;;  %v2083_v8 = vld [vmem:[%s2676_s5 + $0x70] sm:$0xff]   ;;  %s2165_s0 = smov 120  }
  0x1b   :  { %v2086_v9 = vld [vmem:[%s2676_s5 + $0x38] sm:$0xff]   ;;  %1887 = vmatprep.subr.bf16.mxu1 %v2082_v7  ;;  %v2088_v10 = vld [vmem:[%s2676_s5 + $0x30] sm:$0xff]   ;;  %v2084_v11 = vld [vmem:[%s2676_s5 + $0x68] sm:$0xff]   ;;  %vm471_vm3 = vcmp.ge.f32.partialorder %v2269_v5, 2.0  ;;  %vm475_vm4 = vcmp.le.f32.partialorder %v2269_v5, 17.0  ;;  %vm470_vm5 = vcmp.ge.f32.partialorder %v2253_v1, 2.0 }
  0x1c   :  { %1907 = vmatprep.subr.bf16.mxu0 %v2086_v9  ;;  %v2090_v13 = vld [vmem:[%s2676_s5 + $0x28] sm:$0xff]   ;;  %v2085_v14 = vld [vmem:[%s2676_s5 + $0x60] sm:$0xff]   ;;  %v2087_v15 = vld [vmem:[%s2676_s5 + $0x58] sm:$0xff]   ;;  %vm474_vm6 = vcmp.le.f32.partialorder %v2253_v1, 17.0  ;;  %vm473_vm8 = vcmp.ge.f32.partialorder %v2258_v2, 2.0  ;;  %vm477_vm9 = vcmp.le.f32.partialorder %v2258_v2, 17.0 }
  0x1d   :  { %v2089_v16 = vld [vmem:[%s2676_s5 + $0x50] sm:$0xff]   ;;  %v1607_v26 = vld [vmem:[%s2674_s3] ss:$0 sm:$0xff] }
  0x1e   :  { %v1608_v30 = vld [vmem:[%s2675_s4] ss:$0 sm:$0xff]  ;;  %s2166_s4 = smov 112  }
  0x80   :  { %v96_v42 = vpop.permute.xlu1 %95 }
  0x81   :  { %v90_v43 = vpop.permute.xlu0 %89  ;;  %vm102_vm11 = vcmp.eq.s32.totalorder %v96_v42, 1  ;;  %v2092_v42 = vld [vmem:[%s2676_s5 + $0x20] sm:$0xff]  }
  0x82   :  { %vm100_vm12 = vcmp.eq.s32.totalorder %v90_v43, 1  ;;  %v106_v48 = vsel %vm102_vm11, %v69_v37, 0.0  ;;  %vm472_vm11 = vcmp.ge.f32.partialorder %v2248_v0, 2.0 }
  0x83   :  { %v104_v50 = vsel %vm100_vm12, %v71_v38, 0.0  ;;  %vm476_vm12 = vcmp.le.f32.partialorder %v2248_v0, 17.0 }
  0x84   :  { %v99_v45 = vpop.permute.xlu1 %98 }
  0x85   :  { %vm103_vm13 = vcmp.eq.s32.totalorder %v99_v45, 1  ;;  %v93_v47 = vpop.permute.xlu0 %92 }
  0x86   :  { %v107_v49 = vsel %vm103_vm13, %v68_v44, 0.0  ;;  %vm101_vm14 = vcmp.eq.s32.totalorder %v93_v47, 1  ;;  %vm481_vm13 = vmand %vm473_vm8, %vm477_vm9  ;;  %vm752_vm8 = vcmp.le.f32.partialorder %v2248_v0, 13.0 }
  0x87   :  { %v109_v51 = vpack.c.bf16 %v107_v49, %v106_v48  ;;  %v105_v52 = vsel %vm101_vm14, %v70_v46, 0.0  ;;  %vm747_vm14 = vcmp.ge.f32.partialorder %v2269_v5, -2.0 }
  0x88   :  { %v310_v53 = vpop.permute.xlu1 %309  ;;  %v108_v55 = vpack.c.bf16 %v105_v52, %v104_v50  ;;  %v2093_v50 = vld [vmem:[%s2676_s5 + $0x40] sm:$0xff]  }
  0x89   :  { %vm318_vm15 = vcmp.eq.s32.totalorder %v310_v53, 1  ;;  %v307_v56 = vpop.permute.xlu0 %306  ;;  %v2094_v53 = vld [vmem:[%s2676_s5 + $0x18] sm:$0xff]  }
  0x8a   :  { %v322_v57 = vsel %vm318_vm15, %v286_v39, 0.0  ;;  %vm317_vm0 = vcmp.eq.s32.totalorder %v307_v56, 1  ;;  %1873 = vmatprep.mubr.msk.bf16.mxu1 %vm151_vm7, %v108_v55  ;;  %vm751_vm15 = vcmp.le.f32.partialorder %v2269_v5, 13.0 }
  0x8b   :  { %v321_v58 = vsel %vm317_vm0, %v287_v54, 0.0  ;;  %1874 = vmatmul.mubr.msk.bf16.vlgmr.msra.gmra.mxu1 %vm151_vm7, %v109_v51  ;;  %vm480_vm0 = vmand %vm472_vm11, %vm476_vm12  ;;  %vm465_vm11 = vcmp.lt.s32.totalorder %v2301_v12, 2 }
  0x8c   :  { %v325_v59 = vpack.c.bf16 %v322_v57, %v321_v58  ;;  %v316_v60 = vpop.permute.xlu1 %315  ;;  %1888 = vmatpush3.bf16.msra.mxu1 %v2082_v7 }
  0x8d   :  { %vm320_vm1 = vcmp.eq.s32.totalorder %v316_v60, 1  ;;  %v313_v62 = vpop.permute.xlu0 %312  ;;  %1889 = vmatprep.subr.bf16.mxu1 %v2083_v8 }
  0x8e   :  { %v324_v63 = vsel %vm320_vm1, %v288_v40, 0.0  ;;  %vm319_vm2 = vcmp.eq.s32.totalorder %v313_v62, 1  ;;  %1883 = vmatprep.mubr.msk.bf16.mxu0 %vm151_vm7, %v325_v59  ;;  %v2091_v40 = vld [vmem:[%s2676_s5 + $0x48] sm:$0xff]   ;;  %vm746_vm1 = vcmp.ge.f32.partialorder %v2253_v1, -2.0 }
  0x8f   :  { %v323_v3 = vsel %vm319_vm2, %v285_v61, 0.0  ;;  %v2422_v61 = vld [vmem:[%s2676_s5 + $0xb8] sm:$0xff]   ;;  %vm750_vm2 = vcmp.le.f32.partialorder %v2253_v1, 13.0 }
  0x90   :  { %v326_v6 = vpack.c.bf16 %v324_v63, %v323_v3  ;;  %1890 = vmatpush3.bf16.msra.mxu1 %v2083_v8  ;;  %v2096_v3 = vld [vmem:[%s2676_s5 + $0x10] sm:$0xff]  }
  0x91   :  { %1891 = vmatprep.subr.bf16.mxu1 %v2084_v11 }
  0x92   :  { %1884 = vmatmul.mubr.msk.bf16.vlgmr.msra.gmra.mxu0 %vm151_vm7, %v326_v6  ;;  %vm479_vm7 = vmand %vm471_vm3, %vm475_vm4  ;;  %vm749_vm4 = vcmp.ge.f32.partialorder %v2258_v2, -2.0 }
  0x93   :  { %1908 = vmatpush3.bf16.msra.mxu0 %v2086_v9  ;;  %vm755_vm3 = vmand %vm747_vm14, %vm751_vm15  ;;  %vm741_vm15 = vcmp.lt.s32.totalorder %v2301_v12, 6 }
  0x94   :  { %1909 = vmatprep.subr.bf16.mxu0 %v2088_v10  ;;  %1892 = vmatpush3.bf16.msra.mxu1 %v2084_v11  ;;  %v759_v5 = vsel %vm755_vm3, 1, %v2164_v4 }
  0x95   :  { %1893 = vmatprep.subr.bf16.mxu1 %v2085_v14 }
  0x97   :  { %1910 = vmatpush3.bf16.msra.mxu0 %v2088_v10 }
  0x98   :  { %1911 = vmatprep.subr.bf16.mxu0 %v2090_v13  ;;  %1894 = vmatpush3.bf16.msra.mxu1 %v2085_v14  ;;  %v483_v14 = vsel %vm479_vm7, 1, %v2164_v4  ;;  %vm748_vm7 = vcmp.ge.f32.partialorder %v2248_v0, -2.0 }
  0x99   :  { %1895 = vmatprep.subr.bf16.mxu1 %v2087_v15 }
  0x9b   :  { %1912 = vmatpush3.bf16.msra.mxu0 %v2090_v13  ;;  %v2098_v13 = vld [vmem:[%s2676_s5 + $0x8] sm:$0xff]  }
  0x9c   :  { %1896 = vmatpush3.bf16.msra.mxu1 %v2087_v15  ;;  %1913 = vmatprep.subr.bf16.mxu0 %v2092_v42 }
  0x9d   :  { %1897 = vmatprep.subr.bf16.mxu1 %v2089_v16 }
  0x9f   :  { %1914 = vmatpush3.bf16.msra.mxu0 %v2092_v42 }
  0xa0   :  { %1898 = vmatpush3.bf16.msra.mxu1 %v2089_v16  ;;  %1915 = vmatprep.subr.bf16.mxu0 %v2094_v53  ;;  %v2100_v16 = vld [vmem:[%s2676_s5] sm:$0xff]  }
  0xa1   :  { %1899 = vmatprep.subr.bf16.mxu1 %v2091_v40 }
  0xa3   :  { %1916 = vmatpush3.bf16.msra.mxu0 %v2094_v53  ;;  %v2102_v53 = vld [vmem:[%s2676_s5 + $0x98] sm:$0xff]  }
  0xa4   :  { %1900 = vmatpush3.bf16.msra.mxu1 %v2091_v40  ;;  %1917 = vmatprep.subr.bf16.mxu0 %v2096_v3 }
  0xa5   :  { %1901 = vmatprep.subr.bf16.mxu1 %v2093_v50 }
  0xa7   :  { %1918 = vmatpush3.bf16.msra.mxu0 %v2096_v3 }
  0xa8   :  { %1902 = vmatpush3.bf16.msra.mxu1 %v2093_v50  ;;  %1919 = vmatprep.subr.bf16.mxu0 %v2098_v13 }
  0xa9   :  { %1927 = vmatprep.subr.bf16.mxu1 %v2422_v61 }
  0xab   :  { %1920 = vmatpush3.bf16.msra.mxu0 %v2098_v13  ;;  %v2112_v13 = vld [vmem:[%s2679_s8 + $0x20] sm:$0xff]  }
  0xac   :  { %1921 = vmatprep.subr.bf16.mxu0 %v2100_v16 }
  0xaf   :  { %1922 = vmatpush3.bf16.msra.mxu0 %v2100_v16  ;;  %v2115_v16 = vld [vmem:[%s2679_s8 + $0x58] sm:$0xff]  }
  0xd0   :  { %v1865_v17 = vpop.f32.mrf.mxu0 }
  0xd2   :  { %v192_v18 = vpop.f32.mrf.mxu0 }
  0xd4   :  { %v1866_v20 = vpop.f32.mrf.mxu0 }
  0xd6   :  { %v195_v22 = vpop.f32.mrf.mxu0 }
 0x14b   :  { %v1875_v19 = vpop.f32.mrf.mxu1 }
 0x14c   :  { %v274_v24 = vadd.f32 %v1875_v19, %v1865_v17  ;;  %v485_v17 = vsel %vm481_vm13, 1, %v2164_v4 }
 0x14d   :  { %v265_v21 = vpop.f32.mrf.mxu1 }
 0x14e   :  { %v266_v27 = vadd.f32 %v265_v21, %v192_v18  ;;  %v484_v18 = vsel %vm480_vm0, 1, %v2164_v4 }
 0x14f   :  { %v1876_v23 = vpop.f32.mrf.mxu1 }
 0x150   :  { %v277_v32 = vadd.f32 %v1876_v23, %v1866_v20 }
 0x151   :  { %v268_v29 = vpop.f32.mrf.mxu1 }
 0x152   :  { %v1885_v25 = vpop.f32.mrf.mxu0  ;;  %v269_v36 = vadd.f32 %v268_v29, %v195_v22 }
 0x153   :  { %v409_v28 = vadd.f32 %v1885_v25, %v274_v24 }
 0x154   :  { %v392_v31 = vpop.f32.mrf.mxu0 }
 0x155   :  { %v420_v33 = vmul.f32 %v1607_v26, %v409_v28  ;;  %v407_v34 = vadd.f32 %v392_v31, %v266_v27 }
 0x156   :  { %v1886_v35 = vpop.f32.mrf.mxu0 }
 0x157   :  { %v431_v37 = vadd.f32 %v1608_v30, %v420_v33  ;;  %v418_v38 = vmul.f32 %v1607_v26, %v407_v34  ;;  %v410_v39 = vadd.f32 %v1886_v35, %v277_v32  ;;  %v2097_v32 = vld [vmem:[%s2676_s5 + $0xb0] sm:$0xff]  }
 0x158   :  { %v395_v41 = vpop.f32.mrf.mxu0 }
 0x159   :  { %v429_v43 = vadd.f32 %v1608_v30, %v418_v38  ;;  %v421_v44 = vmul.f32 %v1607_v26, %v410_v39  ;;  %v408_v45 = vadd.f32 %v395_v41, %v269_v36  ;;  %v435_v46 = vmax.f32 %v431_v37, 0.0  ;;  %v2099_v37 = vld [vmem:[%s2676_s5 + $0xa8] sm:$0xff]  }
 0x15b   :  { %v433_v47 = vmax.f32 %v429_v43, 0.0  ;;  %v432_v48 = vadd.f32 %v1608_v30, %v421_v44  ;;  %v419_v49 = vmul.f32 %v1607_v26, %v408_v45  ;;  %v439_v54 = vrot.slane %v435_v46, 1  ;;  %v2101_v45 = vld [vmem:[%s2676_s5 + $0xa0] sm:$0xff]  }
 0x15d   :  { %v436_v51 = vmax.f32 %v432_v48, 0.0  ;;  %v430_v52 = vadd.f32 %v1608_v30, %v419_v49  ;;  %v437_v55 = vrot.slane %v433_v47, 1 }
 0x15f   :  { %v440_v56 = vrot.slane %v436_v51, 1  ;;  %v434_v57 = vmax.f32 %v430_v52, 0.0 }
 0x161   :  { %v438_v58 = vrot.slane %v434_v57, 1  ;;  %v441_v59 = vsel %vm284_vm10, %v439_v54, %v440_v56  ;;  %v444_v60 = vsel %vm284_vm10, %v440_v56, %v437_v55  ;;  %v2103_v56 = vld [vmem:[%s2676_s5 + $0x90] sm:$0xff]  }
 0x162   :  { %v2424_v62 = vmax.f32 %v435_v46, %v441_v59  ;;  %v2426_v63 = vmax.f32 %v436_v51, %v444_v60 }
 0x163   :  { %v442_v6 = vsel %vm284_vm10, %v438_v58, %v439_v54  ;;  %v443_v7 = vsel %vm284_vm10, %v437_v55, %v438_v58  ;;  %vm478_vm10 = vmand %vm470_vm5, %vm474_vm6  ;;  %vm753_vm5 = vcmp.le.f32.partialorder %v2258_v2, 13.0  ;;  %v2105_v58 = vld [vmem:[%s2676_s5 + $0x80] sm:$0xff]  }
 0x164   :  { %v2056_v8 = vpack.i.bf16 %v2426_v63, %v2424_v62  ;;  %v445_v9 = vmax.f32 %v433_v47, %v443_v7  ;;  %v446_v10 = vmax.f32 %v434_v57, %v442_v6  ;;  %v482_v15 = vsel %vm478_vm10, 1, %v2164_v4  ;;  %vm754_vm6 = vmand %vm746_vm1, %vm750_vm2  ;;  %v2104_v57 = vld [vmem:[%s2676_s5 + $0x88] sm:$0xff]   ;;  %v2106_v6 = vld [vmem:[%s2679_s8 + $0x38] sm:$0xff]  }
 0x165   :  { %vm757_vm9 = vmand %vm749_vm4, %vm753_vm5  ;;  %v758_v1 = vsel %vm754_vm6, 1, %v2164_v4  ;;  %v2107_v7 = vld [vmem:[%s2679_s8 + $0x78] sm:$0xff]  }
 0x166   :  { %2057 = vrot.lane.b32.xlu1 %v2056_v8, %s2165_s0  ;;  %v2051_v11 = vpack.i.bf16 %v446_v10, %v445_v9  ;;  %vm756_vm10 = vmand %vm748_vm7, %vm752_vm8  ;;  %v761_v19 = vsel %vm757_vm9, 1, %v2164_v4  ;;  %v2108_v8 = vld [vmem:[%s2679_s8 + $0x30] sm:$0xff]   ;;  %1947 = vmatprep.subr.bf16.mxu0 %v2107_v7  ;;  %vm974_vm9 = vcmp.lt.s32.totalorder %v2301_v12, 4 }
 0x167   :  { %v760_v2 = vsel %vm756_vm10, 1, %v2164_v4  ;;  %vm2168_vm10 = vmmov 0  }
 0x168   :  { %2052 = vrot.lane.b32.xlu0 %v2051_v11, %s2165_s0  ;;  %v2111_v11 = vld [vmem:[%s2679_s8 + $0x68] sm:$0xff]  }
 0x16a   :  { %490 = vperm.xlu1 %2050, %v483_v14   ;;  %v2113_v14 = vld [vmem:[%s2679_s8 + $0x60] sm:$0xff]  }
 0x16c   :  { %487 = vperm.xlu0 %2049, %v482_v15   ;;  %v2114_v15 = vld [vmem:[%s2679_s8 + $0x18] sm:$0xff]  }
 0x16e   :  { %496 = vperm.xlu1 %2050, %v485_v17   ;;  %v2116_v17 = vld [vmem:[%s2679_s8 + $0x10] sm:$0xff]  }
 0x170   :  { %493 = vperm.xlu0 %2049, %v484_v18   ;;  %v2117_v18 = vld [vmem:[%s2679_s8 + $0x50] sm:$0xff]  }
 0x172   :  { %766 = vperm.xlu1 %2050, %v759_v5  }
 0x174   :  { %763 = vperm.xlu0 %2049, %v758_v1  }
 0x176   :  { %772 = vperm.xlu1 %2050, %v761_v19  }
 0x178   :  { %769 = vperm.xlu0 %2049, %v760_v2  }
 0x1d8   :  { %v2058_v20 = vpop.permute.xlu1 %2057 }
 0x1d9   :  { %v2060_v21 = vunpack.i.h.bf16 %v2058_v20  ;;  %v2059_v22 = vunpack.i.l.bf16 %v2058_v20 }
 0x1da   :  { %v2053_v23 = vpop.permute.xlu0 %2052 }
 0x1db   :  { %v2055_v24 = vunpack.i.h.bf16 %v2053_v23  ;;  %v2054_v25 = vunpack.i.l.bf16 %v2053_v23  ;;  %v2469_v0 = vmax.f32 %v2426_v63, %v2060_v21  ;;  %v2472_v26 = vmax.f32 %v2424_v62, %v2059_v22 }
 0x1dd   :  { %v458_v27 = vmax.f32 %v446_v10, %v2055_v24  ;;  %v2474_v28 = vmax.f32 %v445_v9, %v2054_v25  ;;  %v525_v31 = vpack.c.bf16 %v2469_v0, %v2472_v26  ;;  %v464_v33 = vrot.slane %v2469_v0, 6  ;;  %v2109_v9 = vld [vmem:[%s2679_s8 + $0x70] sm:$0xff]   ;;  %v2110_v10 = vld [vmem:[%s2679_s8 + $0x28] sm:$0xff]   ;;  %v1677_v25 = vld [vmem:[%s2677_s6] ss:$0 sm:$0xff]  ;;  %s2169_s6 = smov [#allocation2]  }
 0x1de   :  { %v463_v38 = vrot.slane %v2472_v26, 6  ;;  %v739_v46 = vrot.slane %v2472_v26, 2  ;;  %v740_v59 = vrot.slane %v2469_v0, 2 }
 0x1df   :  { %v462_v29 = vrot.slane %v458_v27, 6  ;;  %v461_v4 = vrot.slane %v2474_v28, 6  ;;  %v524_v30 = vpack.c.bf16 %v458_v27, %v2474_v28  ;;  %v738_v41 = vrot.slane %v458_v27, 2 }
 0x1e0   :  { %v737_v42 = vrot.slane %v2474_v28, 2  ;;  %v466_v48 = vsel %vm465_vm11, %v463_v38, %v464_v33  ;;  %v742_v63 = vsel %vm741_vm15, %v739_v46, %v740_v59  ;;  %v1678_v28 = vld [vmem:[%s2678_s7] ss:$0 sm:$0xff] }
 0x1e1   :  { %1903 = vmatprep.mubr.bf16.mxu1 %v524_v30  ;;  %v468_v35 = vsel %vm465_vm11, %v461_v4, %v462_v29  ;;  %v469_v36 = vsel %vm465_vm11, %v464_v33, %v461_v4  ;;  %v467_v44 = vsel %vm465_vm11, %v462_v29, %v463_v38  ;;  %v743_v51 = vsel %vm741_vm15, %v738_v41, %v739_v46  ;;  %v2119_v46 = vld [vmem:[%s2679_s8 + $0x48] sm:$0xff]  }
 0x1e2   :  { %1904 = vmatmul.mubr.bf16.vlgmr.msra.gmra.mxu1 %v525_v31  ;;  %v1642_v40 = vpack.c.bf16 %v468_v35, %v469_v36  ;;  %v1645_v49 = vpack.c.bf16 %v466_v48, %v467_v44  ;;  %v744_v52 = vsel %vm741_vm15, %v737_v42, %v738_v41  ;;  %vm1435_vm11 = vcmask 261120  }
 0x1e3   :  { %1928 = vmatpush3.bf16.msra.mxu1 %v2422_v61  ;;  %v1672_v55 = vpack.c.bf16 %v743_v51, %v744_v52  ;;  %v745_v61 = vsel %vm741_vm15, %v740_v59, %v737_v42 }
 0x1e4   :  { %1929 = vmatprep.subr.bf16.mxu1 %v2097_v32  ;;  %v1675_v3 = vpack.c.bf16 %v745_v61, %v742_v63 }
 0x1e5   :  { %v491_v34 = vpop.permute.xlu1 %490 }
 0x1e6   :  { %vm499_vm12 = vcmp.eq.s32.totalorder %v491_v34, 1 }
 0x1e7   :  { %v488_v39 = vpop.permute.xlu0 %487  ;;  %1930 = vmatpush3.bf16.msra.mxu1 %v2097_v32 }
 0x1e8   :  { %vm498_vm13 = vcmp.eq.s32.totalorder %v488_v39, 1  ;;  %1931 = vmatprep.subr.bf16.mxu1 %v2099_v37 }
 0x1e9   :  { %vm1641_vm14 = vmpackc.low %vm499_vm12, %vm498_vm13  ;;  %v497_v43 = vpop.permute.xlu1 %496 }
 0x1ea   :  { %1923 = vmatprep.mubr.msk.bf16.mxu0 %vm1641_vm14, %v1642_v40  ;;  %vm501_vm0 = vcmp.eq.s32.totalorder %v497_v43, 1 }
 0x1eb   :  { %v494_v47 = vpop.permute.xlu0 %493  ;;  %1932 = vmatpush3.bf16.msra.mxu1 %v2099_v37  ;;  %v2118_v37 = vld [vmem:[%s2679_s8 + $0x8] sm:$0xff]  }
 0x1ec   :  { %vm500_vm1 = vcmp.eq.s32.totalorder %v494_v47, 1  ;;  %1933 = vmatprep.subr.bf16.mxu1 %v2101_v45  ;;  %v2120_v47 = vld [vmem:[%s2679_s8] sm:$0xff]  }
 0x1ed   :  { %vm1644_vm2 = vmpackc.low %vm501_vm0, %vm500_vm1  ;;  %v767_v50 = vpop.permute.xlu1 %766 }
 0x1ee   :  { %1924 = vmatmul.mubr.msk.bf16.vlgmr.msra.gmra.mxu0 %vm1644_vm2, %v1645_v49  ;;  %vm775_vm3 = vcmp.eq.s32.totalorder %v767_v50, 1 }
 0x1ef   :  { %v764_v54 = vpop.permute.xlu0 %763  ;;  %1934 = vmatpush3.bf16.msra.mxu1 %v2101_v45  ;;  %1948 = vmatpush3.bf16.msra.mxu0 %v2107_v7  ;;  %v2123_v7 = vld [vmem:[%s2679_s8 + $0xb8] sm:$0xff]  }
 0x1f0   :  { %vm774_vm4 = vcmp.eq.s32.totalorder %v764_v54, 1  ;;  %1935 = vmatprep.subr.bf16.mxu1 %v2102_v53  ;;  %1949 = vmatprep.subr.bf16.mxu0 %v2109_v9  ;;  %v2121_v54 = vld [vmem:[%s2679_s8 + $0x40] sm:$0xff]  }
 0x1f1   :  { %vm1671_vm5 = vmpackc.low %vm775_vm3, %vm774_vm4  ;;  %v773_v62 = vpop.permute.xlu1 %772 }
 0x1f2   :  { %1943 = vmatprep.mubr.msk.bf16.mxu1 %vm1671_vm5, %v1672_v55  ;;  %vm777_vm7 = vcmp.eq.s32.totalorder %v773_v62, 1  ;;  %v2122_v55 = vld [vmem:[%s2679_s8 + $0xf8] sm:$0xff]  }
 0x1f3   :  { %1936 = vmatpush3.bf16.msra.mxu1 %v2102_v53  ;;  %v770_v60 = vpop.permute.xlu0 %769  ;;  %1950 = vmatpush3.bf16.msra.mxu0 %v2109_v9 }
 0x1f4   :  { %1937 = vmatprep.subr.bf16.mxu1 %v2103_v56  ;;  %vm776_vm6 = vcmp.eq.s32.totalorder %v770_v60, 1  ;;  %1951 = vmatprep.subr.bf16.mxu0 %v2111_v11 }
 0x1f5   :  { %vm1674_vm8 = vmpackc.low %vm777_vm7, %vm776_vm6 }
 0x1f7   :  { %1938 = vmatpush3.bf16.msra.mxu1 %v2103_v56  ;;  %1952 = vmatpush3.bf16.msra.mxu0 %v2111_v11 }
 0x1f8   :  { %1939 = vmatprep.subr.bf16.mxu1 %v2104_v57  ;;  %1953 = vmatprep.subr.bf16.mxu0 %v2113_v14 }
 0x1fb   :  { %1940 = vmatpush3.bf16.msra.mxu1 %v2104_v57  ;;  %1954 = vmatpush3.bf16.msra.mxu0 %v2113_v14 }
 0x1fc   :  { %1941 = vmatprep.subr.bf16.mxu1 %v2105_v58  ;;  %1955 = vmatprep.subr.bf16.mxu0 %v2115_v16 }
 0x1ff   :  { %1942 = vmatpush3.bf16.msra.mxu1 %v2105_v58  ;;  %1956 = vmatpush3.bf16.msra.mxu0 %v2115_v16 }
 0x200   :  { %1967 = vmatprep.subr.bf16.mxu1 %v2106_v6  ;;  %1957 = vmatprep.subr.bf16.mxu0 %v2117_v18 }
 0x202   :  { %1944 = vmatmul.mubr.msk.bf16.vlgmr.msra.gmra.mxu1 %vm1674_vm8, %v1675_v3 }
 0x203   :  { %1968 = vmatpush3.bf16.msra.mxu1 %v2106_v6  ;;  %1958 = vmatpush3.bf16.msra.mxu0 %v2117_v18 }
 0x204   :  { %1969 = vmatprep.subr.bf16.mxu1 %v2108_v8  ;;  %1959 = vmatprep.subr.bf16.mxu0 %v2119_v46 }
 0x207   :  { %1970 = vmatpush3.bf16.msra.mxu1 %v2108_v8  ;;  %1960 = vmatpush3.bf16.msra.mxu0 %v2119_v46 }
 0x208   :  { %1971 = vmatprep.subr.bf16.mxu1 %v2110_v10  ;;  %1961 = vmatprep.subr.bf16.mxu0 %v2121_v54 }
 0x20b   :  { %1972 = vmatpush3.bf16.msra.mxu1 %v2110_v10  ;;  %1962 = vmatpush3.bf16.msra.mxu0 %v2121_v54 }
 0x20c   :  { %1973 = vmatprep.subr.bf16.mxu1 %v2112_v13  ;;  %1987 = vmatprep.subr.bf16.mxu0 %v2123_v7 }
 0x20f   :  { %1974 = vmatpush3.bf16.msra.mxu1 %v2112_v13 }
 0x210   :  { %1975 = vmatprep.subr.bf16.mxu1 %v2114_v15 }
 0x213   :  { %1976 = vmatpush3.bf16.msra.mxu1 %v2114_v15 }
 0x214   :  { %1977 = vmatprep.subr.bf16.mxu1 %v2116_v17 }
 0x217   :  { %1978 = vmatpush3.bf16.msra.mxu1 %v2116_v17 }
 0x218   :  { %1979 = vmatprep.subr.bf16.mxu1 %v2118_v37 }
 0x21b   :  { %1980 = vmatpush3.bf16.msra.mxu1 %v2118_v37  ;;  %v2133_v37 = vld [vmem:[%s2679_s8 + $0x90] sm:$0xff]  }
 0x21c   :  { %1981 = vmatprep.subr.bf16.mxu1 %v2120_v47 }
 0x21f   :  { %1982 = vmatpush3.bf16.msra.mxu1 %v2120_v47 }
 0x220   :  { %2007 = vmatprep.subr.bf16.mxu1 %v2122_v55 }
 0x2a2   :  { %v1905_v5 = vpop.f32.mrf.mxu1 }
 0x2a4   :  { %v625_v1 = vpop.f32.mrf.mxu1 }
 0x2a6   :  { %v1906_v2 = vpop.f32.mrf.mxu1 }
 0x2a8   :  { %v628_v21 = vpop.f32.mrf.mxu1 }
 0x2ae   :  { %v1925_v19 = vpop.f32.mrf.mxu0 }
 0x2af   :  { %v731_v23 = vadd.f32 %v1925_v19, %v1905_v5 }
 0x2b0   :  { %v722_v20 = vpop.f32.mrf.mxu0 }
 0x2b1   :  { %v723_v0 = vadd.f32 %v722_v20, %v625_v1 }
 0x2b2   :  { %v1926_v22 = vpop.f32.mrf.mxu0 }
 0x2b3   :  { %v734_v4 = vadd.f32 %v1926_v22, %v1906_v2 }
 0x2b4   :  { %v725_v27 = vpop.f32.mrf.mxu0 }
 0x2b5   :  { %v726_v33 = vadd.f32 %v725_v27, %v628_v21 }
 0x2c2   :  { %v1945_v24 = vpop.f32.mrf.mxu1 }
 0x2c3   :  { %v900_v26 = vadd.f32 %v1945_v24, %v731_v23 }
 0x2c4   :  { %v883_v29 = vpop.f32.mrf.mxu1 }
 0x2c5   :  { %v911_v30 = vmul.f32 %v1677_v25, %v900_v26  ;;  %v898_v31 = vadd.f32 %v883_v29, %v723_v0  ;;  %v2125_v29 = vld [vmem:[%s2679_s8 + $0xb0] sm:$0xff]  }
 0x2c6   :  { %v1946_v32 = vpop.f32.mrf.mxu1 }
 0x2c7   :  { %v922_v34 = vadd.f32 %v1678_v28, %v911_v30  ;;  %v909_v35 = vmul.f32 %v1677_v25, %v898_v31  ;;  %v901_v36 = vadd.f32 %v1946_v32, %v734_v4  ;;  %v2126_v30 = vld [vmem:[%s2679_s8 + $0xe8] sm:$0xff]   ;;  %v2128_v32 = vld [vmem:[%s2679_s8 + $0xe0] sm:$0xff]  }
 0x2c8   :  { %v886_v38 = vpop.f32.mrf.mxu1  ;;  %v2127_v31 = vld [vmem:[%s2679_s8 + $0xa8] sm:$0xff]  }
 0x2c9   :  { %v920_v39 = vadd.f32 %v1678_v28, %v909_v35  ;;  %v912_v40 = vmul.f32 %v1677_v25, %v901_v36  ;;  %v899_v41 = vadd.f32 %v886_v38, %v726_v33  ;;  %v926_v42 = vmax.f32 %v922_v34, 0.0  ;;  %v2129_v33 = vld [vmem:[%s2679_s8 + $0xa0] sm:$0xff]   ;;  %v2130_v34 = vld [vmem:[%s2679_s8 + $0xd8] sm:$0xff]   ;;  %v2132_v36 = vld [vmem:[%s2679_s8 + $0xd0] sm:$0xff]  }
 0x2ca   :  { %v2131_v35 = vld [vmem:[%s2679_s8 + $0x98] sm:$0xff]   ;;  %v2134_v38 = vld [vmem:[%s2679_s8 + $0xc8] sm:$0xff]  }
 0x2cb   :  { %v924_v43 = vmax.f32 %v920_v39, 0.0  ;;  %v923_v44 = vadd.f32 %v1678_v28, %v912_v40  ;;  %v910_v45 = vmul.f32 %v1677_v25, %v899_v41  ;;  %v930_v50 = vrot.slane %v926_v42, 2  ;;  %v2124_v25 = vld [vmem:[%s2679_s8 + $0xf0] sm:$0xff]   ;;  %v2135_v39 = vld [vmem:[%s2679_s8 + $0x88] sm:$0xff]   ;;  %v2136_v40 = vld [vmem:[%s2679_s8 + $0xc0] sm:$0xff]  }
 0x2cc   :  { %v2137_v41 = vld [vmem:[%s2679_s8 + $0x80] sm:$0xff]  }
 0x2cd   :  { %v927_v48 = vmax.f32 %v923_v44, 0.0  ;;  %v921_v49 = vadd.f32 %v1678_v28, %v910_v45  ;;  %v928_v51 = vrot.slane %v924_v43, 2  ;;  %v2167_v44 = vmov 0.0  }
 0x2cf   :  { %v931_v52 = vrot.slane %v927_v48, 2  ;;  %v925_v53 = vmax.f32 %v921_v49, 0.0 }
 0x2d1   :  { %v929_v56 = vrot.slane %v925_v53, 2  ;;  %v932_v57 = vsel %vm741_vm15, %v930_v50, %v931_v52  ;;  %v935_v58 = vsel %vm741_vm15, %v931_v52, %v928_v51 }
 0x2d2   :  { %v938_v59 = vmax.f32 %v926_v42, %v932_v57  ;;  %v939_v60 = vmax.f32 %v927_v48, %v935_v58 }
 0x2d3   :  { %v933_v61 = vsel %vm741_vm15, %v929_v56, %v930_v50  ;;  %v934_v62 = vsel %vm741_vm15, %v928_v51, %v929_v56 }
 0x2d4   :  { %v2066_v63 = vpack.i.bf16 %v939_v60, %v938_v59  ;;  %v936_v3 = vmax.f32 %v924_v43, %v934_v62  ;;  %v937_v6 = vmax.f32 %v925_v53, %v933_v61 }
 0x2d6   :  { %2067 = vrot.lane.b32.xlu1 %v2066_v63, %s2166_s4  ;;  %v2061_v8 = vpack.i.bf16 %v937_v6, %v936_v3 }
 0x2d8   :  { %2062 = vrot.lane.b32.xlu0 %v2061_v8, %s2166_s4 }
 0x348   :  { %v2068_v9 = vpop.permute.xlu1 %2067 }
 0x349   :  { %v2070_v10 = vunpack.i.h.bf16 %v2068_v9  ;;  %v2069_v11 = vunpack.i.l.bf16 %v2068_v9 }
 0x34a   :  { %v2063_v13 = vpop.permute.xlu0 %2062 }
 0x34b   :  { %v2593_v14 = vmax.f32 %v939_v60, %v2070_v10  ;;  %v950_v15 = vmax.f32 %v938_v59, %v2069_v11  ;;  %v2065_v16 = vunpack.i.h.bf16 %v2063_v13  ;;  %v2064_v17 = vunpack.i.l.bf16 %v2063_v13 }
 0x34d   :  { %v973_v18 = vrot.slane %v2593_v14, 4  ;;  %v972_v5 = vrot.slane %v950_v15, 4  ;;  %v949_v1 = vmax.f32 %v937_v6, %v2065_v16  ;;  %v2596_v19 = vmax.f32 %v936_v3, %v2064_v17  ;;  %v1432_v17 = vld [vmem:[%s2680_s9] sm:$0x1] }
 0x34e   :  { %v953_v22 = vpack.c.bf16 %v2593_v14, %v950_v15 }
 0x34f   :  { %v971_v2 = vrot.slane %v949_v1, 4  ;;  %v970_v20 = vrot.slane %v2596_v19, 4  ;;  %v952_v21 = vpack.c.bf16 %v949_v1, %v2596_v19  ;;  %v975_v24 = vsel %vm974_vm9, %v972_v5, %v973_v18 }
 0x350   :  { %v1192_v4 = vpack.c.bf16 %v950_v15, %v949_v1  ;;  %v1193_v43 = vpack.c.bf16 %v2596_v19, %v2593_v14  ;;  %v1760_v1 = vld [vmem:[%s2681_s10] ss:$0 sm:$0xff]  ;;  %s1570_s10 = sshll.u32 %s2169_s6, 4  ;;  %s1571_s10 = int_to_ptr.vmem [resolvable:$true] %s1570_s10 }
 0x351   :  { %v976_v23 = vsel %vm974_vm9, %v971_v2, %v972_v5  ;;  %1983 = vmatprep.mubr.bf16.mxu1 %v952_v21  ;;  %v977_v0 = vsel %vm974_vm9, %v970_v20, %v971_v2  ;;  %v978_v26 = vsel %vm974_vm9, %v973_v18, %v970_v20  ;;  %v2138_v18 = vld [vmem:[%s2683_s12 + $0x8] sm:$0xff]   ;;  %v2139_v5 = vld [vmem:[%s2683_s12] sm:$0xff]   ;;  %p2147_p1 = scmp.lt.s32.totalorder %s1571_s10, %s1571_s10 }
 0x352   :  { %v1312_v27 = vpack.c.bf16 %v975_v24, %v976_v23  ;;  %1984 = vmatmul.mubr.bf16.vlgmr.msra.gmra.mxu1 %v953_v22  ;;  %v979_v28 = vpack.c.bf16 %v976_v23, %v977_v0  ;;  %v980_v12 = vpack.c.bf16 %v978_v26, %v975_v24  ;;  %v1313_v42 = vpack.c.bf16 %v977_v0, %v978_v26  ;;  %v1761_v2 = vld [vmem:[%s2682_s11] ss:$0 sm:$0xff]  ;;  %s2142_s11 = scalar_lea.vmem %s1571_s10, 32 }
 0x353   :  { %2008 = vmatpush3.bf16.msra.mxu1 %v2122_v55  ;;  %v1762_v26 = vld [vmem:[%s2684_s13] ss:$0 sm:$0xff]  ;;  %p2143_p0 = scmp.ne.s32.totalorder %s1571_s10, %s2142_s11  ;;  %p2148_p2 = scmp.lt.s32.totalorder %s2142_s11, %s2142_s11 }
 0x354   :  { %2023 = vmatprep.mubr.bf16.mxu1 %v1312_v27  ;;  %1963 = vmatprep.mubr.bf16.mxu0 %v979_v28 }
 0x355   :  { %2009 = vmatprep.subr.bf16.mxu1 %v2124_v25  ;;  %1964 = vmatmul.mubr.bf16.vlgmr.msra.gmra.mxu0 %v980_v12  ;;  %p2149_p3 = por %p2148_p2, %p2147_p1 }
 0x356   :  { %1988 = vmatpush3.bf16.msra.mxu0 %v2123_v7  ;;  %2003 = vmatprep.mubr.bf16.mxu0 %v1192_v4 }
 0x357   :  { %2010 = vmatpush3.bf16.msra.mxu1 %v2124_v25  ;;  %1989 = vmatprep.subr.bf16.mxu0 %v2125_v29  ;;  %p2150_p4 = pnand %p2149_p3, %p2143_p0 }
 0x358   :  { %2011 = vmatprep.subr.bf16.mxu1 %v2126_v30 }
 0x35a   :  { %1990 = vmatpush3.bf16.msra.mxu0 %v2125_v29 }
 0x35b   :  { %2012 = vmatpush3.bf16.msra.mxu1 %v2126_v30  ;;  %1991 = vmatprep.subr.bf16.mxu0 %v2127_v31 }
 0x35c   :  { %2013 = vmatprep.subr.bf16.mxu1 %v2128_v32 }
 0x35e   :  { %1992 = vmatpush3.bf16.msra.mxu0 %v2127_v31 }
 0x35f   :  { %2014 = vmatpush3.bf16.msra.mxu1 %v2128_v32  ;;  %1993 = vmatprep.subr.bf16.mxu0 %v2129_v33 }
 0x360   :  { %2015 = vmatprep.subr.bf16.mxu1 %v2130_v34 }
 0x362   :  { %1994 = vmatpush3.bf16.msra.mxu0 %v2129_v33 }
 0x363   :  { %2016 = vmatpush3.bf16.msra.mxu1 %v2130_v34  ;;  %1995 = vmatprep.subr.bf16.mxu0 %v2131_v35 }
 0x364   :  { %2017 = vmatprep.subr.bf16.mxu1 %v2132_v36 }
 0x366   :  { %1996 = vmatpush3.bf16.msra.mxu0 %v2131_v35 }
 0x367   :  { %2018 = vmatpush3.bf16.msra.mxu1 %v2132_v36  ;;  %1997 = vmatprep.subr.bf16.mxu0 %v2133_v37 }
 0x368   :  { %2019 = vmatprep.subr.bf16.mxu1 %v2134_v38 }
 0x36a   :  { %1998 = vmatpush3.bf16.msra.mxu0 %v2133_v37 }
 0x36b   :  { %2020 = vmatpush3.bf16.msra.mxu1 %v2134_v38  ;;  %1999 = vmatprep.subr.bf16.mxu0 %v2135_v39 }
 0x36c   :  { %2021 = vmatprep.subr.bf16.mxu1 %v2136_v40 }
 0x36e   :  { %2000 = vmatpush3.bf16.msra.mxu0 %v2135_v39 }
 0x36f   :  { %2022 = vmatpush3.bf16.msra.mxu1 %v2136_v40  ;;  %2001 = vmatprep.subr.bf16.mxu0 %v2137_v41 }
 0x372   :  { %2002 = vmatpush3.bf16.msra.mxu0 %v2137_v41  ;;  %2024 = vmatmul.mubr.bf16.vlgmr.msra.gmra.mxu1 %v1313_v42 }
 0x373   :  { %2027 = vmatprep.subr.bf16.mxu0 %v2167_v44 }
 0x375   :  { %2004 = vmatmul.mubr.bf16.vlgmr.msra.gmra.mxu0 %v1193_v43 }
 0x376   :  { %2031 = vmatprep.mubr.msk.bf16.mxu0 %vm2168_vm10, %v2167_v44 }
 0x412   :  { %v1985_v45 = vpop.f32.mrf.mxu1 }
 0x414   :  { %v1177_v47 = vpop.f32.mrf.mxu1 }
 0x415   :  { %v1965_v46 = vpop.f32.mrf.mxu0 }
 0x416   :  { %v1986_v49 = vpop.f32.mrf.mxu1  ;;  %v1186_v56 = vadd.f32 %v1985_v45, %v1965_v46 }
 0x417   :  { %v1080_v48 = vpop.f32.mrf.mxu0 }
 0x418   :  { %v1180_v51 = vpop.f32.mrf.mxu1  ;;  %v1178_v62 = vadd.f32 %v1177_v47, %v1080_v48 }
 0x419   :  { %v1966_v50 = vpop.f32.mrf.mxu0 }
 0x41a   :  { %v1189_v58 = vadd.f32 %v1986_v49, %v1966_v50 }
 0x41b   :  { %v1083_v53 = vpop.f32.mrf.mxu0 }
 0x41c   :  { %v1181_v63 = vadd.f32 %v1180_v51, %v1083_v53 }
 0x432   :  { %v2025_v52 = vpop.f32.mrf.mxu1 }
 0x434   :  { %v1413_v54 = vpop.f32.mrf.mxu1 }
 0x435   :  { %v2005_v55 = vpop.f32.mrf.mxu0 }
 0x436   :  { %v1310_v59 = vadd.f32 %v2005_v55, %v1186_v56  ;;  %v2026_v60 = vpop.f32.mrf.mxu1 }
 0x437   :  { %v1293_v57 = vpop.f32.mrf.mxu0 }
 0x438   :  { %v1430_v7 = vadd.f32 %v2025_v52, %v1310_v59  ;;  %v1308_v8 = vadd.f32 %v1293_v57, %v1178_v62  ;;  %v1416_v11 = vpop.f32.mrf.mxu1 }
 0x439   :  { %v2006_v61 = vpop.f32.mrf.mxu0 }
 0x43a   :  { %v1311_v3 = vadd.f32 %v2006_v61, %v1189_v58  ;;  %v1428_v15 = vadd.f32 %v1413_v54, %v1308_v8 }
 0x43b   :  { %v1296_v6 = vpop.f32.mrf.mxu0 }
 0x43c   :  { %v1431_v9 = vadd.f32 %v2026_v60, %v1311_v3  ;;  %v1309_v10 = vadd.f32 %v1296_v6, %v1181_v63 }
 0x43e   :  { %v1434_v13 = vpack.c.bf16 %v1431_v9, %v1430_v7  ;;  %v1429_v14 = vadd.f32 %v1416_v11, %v1309_v10 }
 0x440   :  { %2028 = vmatpush3.bf16.msra.mxu0 %v1434_v13  ;;  %v1433_v16 = vpack.c.bf16 %v1429_v14, %v1428_v15 }
 0x441   :  { %2029 = vmatprep.subr.bf16.mxu0 %v2167_v44 }
 0x444   :  { %2030 = vmatpush3.bf16.msra.mxu0 %v1433_v16 }
 0x445   :  { %2035 = vmatprep.subr.bf16.mxu0 %v2167_v44 }
 0x447   :  { %2032 = vmatmul.mubr.msk.bf16.vlgmr.msra.gmra.mxu0 %vm1435_vm11, %v1432_v17 }
 0x448   :  { %2039 = vmatprep.mubr.msk.bf16.mxu0 %vm2168_vm10, %v2167_v44  ;;  %2036 = vmatpush3.bf16.msra.mxu0 %v2138_v18 }
 0x449   :  { %2037 = vmatprep.subr.bf16.mxu0 %v2167_v44 }
 0x44c   :  { %2038 = vmatpush3.bf16.msra.mxu0 %v2139_v5 }
 0x507   :  { %v1473_v19 = vpop.f32.mrf.mxu0 }
 0x508   :  { %v1486_v20 = vmul.f32 %v1760_v1, %v1473_v19 }
 0x509   :  { %v2033_v21 = vpop.f32.mrf.mxu0 }
 0x50a   :  { %v1494_v22 = vadd.f32 %v1761_v2, %v1486_v20 }
 0x50b   :  { %v1476_v23 = vpop.f32.mrf.mxu0 }
 0x50c   :  { %v1495_v24 = vmax.f32 %v1494_v22, 0.0 }
 0x50d   :  { %v2034_v25 = vpop.f32.mrf.mxu0 }
 0x50e   :  { %v1496_v0 = vpack.c.bf16 %v1495_v24, %v1495_v24 }
 0x510   :  { %2040 = vmatmul.mubr.msk.bf16.vlgmr.msra.gmra.mxu0 %vm1435_vm11, %v1496_v0 }
 0x5d0   :  { %v1557_v27 = vpop.f32.mrf.mxu0 }
 0x5d1   :  { %v1558_v28 = vadd.f32 %v1762_v26, %v1557_v27 }
 0x5d2   :  { %v2041_v12 = vpop.f32.mrf.mxu0 }
 0x5d3   :  { %1563 = vst [vmem:[#allocation2] sm:$0x3] %v1558_v28 }
 0x5d4   :  { %v1560_v29 = vpop.f32.mrf.mxu0 }
 0x5d5   :  { %2153 = shalt.err (!%p2150_p4)
}
 0x5d6   :  { %1573 = dma.vmem_to_hbm [thread:$0]  %s1571_s10, 32, %s2685_s14, [#allocation3]   ;;  %v2042_v4 = vpop.f32.mrf.mxu0 }
 0x5d7   :  { %2162 = dma.done.wait [#allocation3], 32  }
 0x5d8   :  { %2163 = vsyncadd [#allocation3], 4294967264 }
 0x5d9   :  { %1577 = vsyncpa [#allocation3], 1 }

</bundles_post_ra>
